<compile_context>
chip_gen: v6e
topology: v6e:2x2x1
jax: 0.10.0
libtpu: 0.0.40
codegen_flags: <defaults>
</compile_context>

<pallas_src>
import functools

import jax
import jax.numpy as jnp
from jax import lax
from jax.experimental import pallas as pl
from jax.experimental.pallas import tpu as pltpu


def _round_up(x, m):
    return ((x + m - 1) // m) * m


def _cdiv(a, b):
    return -(-a // b)


def _clip_reward_kernel(x_ref, t_ref, d_ref, o_ref, *, c1, c2):
    """One row tile: normalize, subtract target, rank-1-projected squared norm."""
    x = x_ref[...].astype(jnp.float32)                                # (TM, D)
    inv_norm = lax.rsqrt(jnp.sum(x * x, axis=-1, keepdims=True))      # EUP rsqrt
    diff = x * inv_norm - t_ref[...]                                  # (TM, D), broadcast (1, D)
    dd = jnp.sum(diff * d_ref[...], axis=-1)                          # (TM,)  diff . direction
    sq = jnp.sum(diff * diff, axis=-1)                                # (TM,)  ||diff||^2
    reward = 1.0 - 0.5 * (c1 * dd * dd + c2 * sq)                     # (TM,)
    o_ref[...] = reward[None, :]                                      # lane-dense (1, TM) store


def clip_reward_forward(img_embeddings, target, direction, alpha, *, block_rows=4096):
    """Pallas wrapper: returns reward of shape [N] (float32).

    img_embeddings: [N, D] (f32 or bf16), target/direction: [1, D].
    Mathematically identical to (x - target) @ P with P = a*d^T d + (1-a)*I.
    """
    N, D = img_embeddings.shape
    in_itemsize = jnp.dtype(img_embeddings.dtype).itemsize

    # ---- row-tile selection -------------------------------------------------
    # Budget ~12 MiB for (2x double-buffered input block + f32 temporaries) so
    # the same tile fits v5e's 16 MiB default scoped VMEM and v7x's 32-of-64 MiB.
    vmem_budget = 12 * 1024 * 1024
    bytes_per_row = D * (2 * in_itemsize + 8)
    tm_cap = max(128, (vmem_budget // bytes_per_row) // 128 * 128)
    tm = min(_round_up(int(block_rows), 128), tm_cap)

    if N <= tm:
        # Single block covering the full row extent (always a legal block shape,
        # no padding, no partial block).
        tm = N
    nblocks = _cdiv(N, tm)

    # v7x megacore: prefer an even step count >= 2 so ("parallel",) splits the
    # batch evenly across both TensorCores.
    if nblocks > 1 and nblocks % 2 == 1:
        tm_even = max(128, _round_up(_cdiv(N, nblocks + 1), 128))
        if _cdiv(N, tm_even) % 2 == 0:
            tm = tm_even
            nblocks = _cdiv(N, tm)

    # ---- scalar buffers / coefficients -------------------------------------
    t = target.reshape(1, D).astype(jnp.float32)
    d = direction.reshape(1, D).astype(jnp.float32)
    d = d * lax.rsqrt(jnp.sum(d * d))                   # one-time glue: ensure unit norm

    a = float(alpha)
    c1 = 2.0 * a - a * a                                # coefficient of (diff . d)^2
    c2 = (1.0 - a) ** 2                                 # coefficient of ||diff||^2

    kernel = functools.partial(_clip_reward_kernel, c1=c1, c2=c2)

    # ---- block specs ---------------------------------------------------------
    block_bytes = tm * D * in_itemsize
    if nblocks >= 3 and block_bytes <= (1 << 20):
        # Tiny per-step compute: deepen the pipeline instead of enlarging tm.
        x_spec = pl.BlockSpec((tm, D), lambda i: (i, 0), pipeline_mode=pl.Buffered(3))
    else:
        x_spec = pl.BlockSpec((tm, D), lambda i: (i, 0))

    cost = pl.CostEstimate(
        flops=6 * N * D,                                # O(N*D) after rank-1 rewrite
        transcendentals=N,                              # one rsqrt per row
        bytes_accessed=in_itemsize * N * D + 4 * N + 2 * 4 * D,
    )

    out = pl.pallas_call(
        kernel,
        out_shape=jax.ShapeDtypeStruct((1, N), jnp.float32),
        grid_spec=pltpu.PrefetchScalarGridSpec(
            num_scalar_prefetch=0,
            grid=(nblocks,),
            in_specs=[
                x_spec,                                     # streamed embedding rows
                pl.BlockSpec((1, D), lambda i: (0, 0)),     # target (VMEM-resident)
                pl.BlockSpec((1, D), lambda i: (0, 0)),     # direction (VMEM-resident)
            ],
            out_specs=pl.BlockSpec((1, tm), lambda i: (0, i)),  # lane-dense output
        ),
        compiler_params=pltpu.CompilerParams(
            dimension_semantics=("parallel",)),             # megacore-split rows on v7x
        cost_estimate=cost,
    )(img_embeddings, t, d)
    return out[0]


def make_clip_reward_buffers(key, embed_dim, n_target=3, n_baseline=3, alpha=0.5):
    """Deterministic synthetic stand-in for CLIPReward.__init__ buffer setup.

    Synthesizes text embeddings (instead of open_clip.encode_text) and then
    follows the module exactly: mean over prompts, normalize, direction,
    projection = alpha * d^T d / ||d||^2 + (1 - alpha) * I.
    """
    kg, kb = jax.random.split(key)
    g_txt = jax.random.normal(kg, (n_target, embed_dim), dtype=jnp.float32)
    b_txt = jax.random.normal(kb, (n_baseline, embed_dim), dtype=jnp.float32)

    g = jnp.mean(g_txt, axis=0, keepdims=True)           # [1, D]
    b = jnp.mean(b_txt, axis=0, keepdims=True)           # [1, D]
    d = g - b

    target = g / jnp.linalg.norm(g)
    baseline = b / jnp.linalg.norm(b)
    direction = d / jnp.linalg.norm(d)

    P = direction.T @ direction / (jnp.linalg.norm(direction) ** 2)   # [D, D]
    I = jnp.eye(embed_dim, dtype=jnp.float32)
    projection = alpha * P + (1.0 - alpha) * I
    return target, baseline, direction, projection


def _reference_forward(img_embeddings, target, projection):
    """Plain-JAX mirror of CLIPReward.forward (uses the full D x D projection)."""
    x = img_embeddings / jnp.linalg.norm(img_embeddings, axis=-1, keepdims=True)
    diff = (x - target) @ projection
    return 1.0 - 0.5 * jnp.sum(diff * diff, axis=-1)


if __name__ == "__main__":
    key = jax.random.PRNGKey(0)
    k_buf, k_img = jax.random.split(key)

    D = 128               # embed dim (multiple of 128 -> full lane occupancy)
    alpha = 0.5

    target, baseline, direction, projection = make_clip_reward_buffers(
        k_buf, D, n_target=3, n_baseline=3, alpha=alpha)

    # TODO(synk): the CLIP image/text encoders (ViT + text transformer) are not
    # re-implemented; synthetic embeddings stand in for CLIPEmbed output.
    cases = [
        # (N, streamed dtype, block_rows)
        (512, jnp.float32, 256),    # aligned 2-step grid (even count, no partial block)
        (640, jnp.float32, 256),    # ragged N -> partial last block + Buffered(3) path
        (200, jnp.float32, 256),    # single full-extent block (grid=1, block = full rows)
        (300, jnp.bfloat16, 128),   # bf16 HBM streaming, 3-step grid, partial last block
    ]
    for N, dt, brows in cases:
        k_img, k = jax.random.split(k_img)
        img_f32 = jax.random.normal(k, (N, D), dtype=jnp.float32)
        img = img_f32.astype(dt)

        reward = clip_reward_forward(img, target, direction, alpha, block_rows=brows)
        reward = jax.block_until_ready(reward)

        # Reference on the same (possibly bf16-quantized) values promoted to f32,
        # using the full D x D projection matrix like the PyTorch module.
        ref = _reference_forward(img.astype(jnp.float32), target, projection)
        assert reward.shape == (N,), reward.shape
        assert bool(jnp.allclose(reward, ref, atol=1e-4, rtol=1e-4)), (
            N, str(dt), float(jnp.max(jnp.abs(reward - ref))))

    print("KERNEL_OK")
</pallas_src>

<mosaic_0001>
module attributes {stable_mosaic.version = 11 : i64} {
  func.func @_clip_reward_kernel(%arg0: i32, %arg1: memref<256x128xf32, #tpu.memory_space<vmem>>, %arg2: memref<1x128xf32, #tpu.memory_space<vmem>>, %arg3: memref<1x128xf32, #tpu.memory_space<vmem>>, %arg4: memref<1x256xf32, #tpu.memory_space<vmem>>) attributes {dimension_semantics = [#tpu.dimension_semantics<parallel>], iteration_bounds = array<i64: 2>, scalar_prefetch = 0 : i64, scratch_operands = 0 : i64, tpu.core_type = #tpu.core_type<tc>, window_params = [{transform_indices = @transform_0, window_bounds = array<i64: 256, 128>}, {pipeline_mode = #tpu.pipeline_mode<synchronous>, transform_indices = @transform_1, window_bounds = array<i64: 1, 128>}, {pipeline_mode = #tpu.pipeline_mode<synchronous>, transform_indices = @transform_2, window_bounds = array<i64: 1, 128>}, {transform_indices = @transform_3, window_bounds = array<i64: 1, 256>}]} {
    %c0 = arith.constant 0 : index
    %c0_0 = arith.constant 0 : index
    %0 = vector.load %arg1[%c0, %c0_0] : memref<256x128xf32, #tpu.memory_space<vmem>>, vector<256x128xf32>
    %1 = arith.mulf %0, %0 : vector<256x128xf32>
    %cst = arith.constant dense<0.000000e+00> : vector<256xf32>
    %2 = vector.multi_reduction <add>, %1, %cst [1] : vector<256x128xf32> to vector<256xf32>
    %3 = vector.shape_cast %2 : vector<256xf32> to vector<256x1xf32>
    %4 = math.rsqrt %3 : vector<256x1xf32>
    %5 = vector.broadcast %4 : vector<256x1xf32> to vector<256x128xf32>
    %6 = arith.mulf %0, %5 : vector<256x128xf32>
    %c0_1 = arith.constant 0 : index
    %c0_2 = arith.constant 0 : index
    %7 = vector.load %arg2[%c0_1, %c0_2] : memref<1x128xf32, #tpu.memory_space<vmem>>, vector<1x128xf32>
    %8 = vector.broadcast %7 : vector<1x128xf32> to vector<256x128xf32>
    %9 = arith.subf %6, %8 : vector<256x128xf32>
    %c0_3 = arith.constant 0 : index
    %c0_4 = arith.constant 0 : index
    %10 = vector.load %arg3[%c0_3, %c0_4] : memref<1x128xf32, #tpu.memory_space<vmem>>, vector<1x128xf32>
    %11 = vector.broadcast %10 : vector<1x128xf32> to vector<256x128xf32>
    %12 = arith.mulf %9, %11 : vector<256x128xf32>
    %cst_5 = arith.constant dense<0.000000e+00> : vector<256xf32>
    %13 = vector.multi_reduction <add>, %12, %cst_5 [1] : vector<256x128xf32> to vector<256xf32>
    %14 = arith.mulf %9, %9 : vector<256x128xf32>
    %cst_6 = arith.constant dense<0.000000e+00> : vector<256xf32>
    %15 = vector.multi_reduction <add>, %14, %cst_6 [1] : vector<256x128xf32> to vector<256xf32>
    %cst_7 = arith.constant 7.500000e-01 : f32
    %16 = vector.broadcast %cst_7 : f32 to vector<256xf32>
    %17 = arith.mulf %16, %13 : vector<256xf32>
    %18 = arith.mulf %17, %13 : vector<256xf32>
    %cst_8 = arith.constant 2.500000e-01 : f32
    %19 = vector.broadcast %cst_8 : f32 to vector<256xf32>
    %20 = arith.mulf %19, %15 : vector<256xf32>
    %21 = arith.addf %18, %20 : vector<256xf32>
    %cst_9 = arith.constant 5.000000e-01 : f32
    %22 = vector.broadcast %cst_9 : f32 to vector<256xf32>
    %23 = arith.mulf %22, %21 : vector<256xf32>
    %cst_10 = arith.constant 1.000000e+00 : f32
    %24 = vector.broadcast %cst_10 : f32 to vector<256xf32>
    %25 = arith.subf %24, %23 : vector<256xf32>
    %26 = vector.shape_cast %25 : vector<256xf32> to vector<1x256xf32>
    %c0_11 = arith.constant 0 : index
    %c0_12 = arith.constant 0 : index
    %27 = vector.load %arg4[%c0_11, %c0_12] : memref<1x256xf32, #tpu.memory_space<vmem>>, vector<1x256xf32>
    tpu.vector_store %arg4[%c0_11, %c0_12], %26 {strides = array<i32>} : memref<1x256xf32, #tpu.memory_space<vmem>>, vector<1x256xf32>,
    return
  }
  func.func @transform_0(%arg0: i32) -> (i32, i32) {
    %c0_i32 = arith.constant 0 : i32
    %c0_i32_0 = arith.constant 0 : i32
    return %arg0, %c0_i32 : i32, i32
  }
  func.func @transform_1(%arg0: i32) -> (i32, i32) {
    %c0_i32 = arith.constant 0 : i32
    %c0_i32_0 = arith.constant 0 : i32
    %c0_i32_1 = arith.constant 0 : i32
    return %c0_i32, %c0_i32_0 : i32, i32
  }
  func.func @transform_2(%arg0: i32) -> (i32, i32) {
    %c0_i32 = arith.constant 0 : i32
    %c0_i32_0 = arith.constant 0 : i32
    %c0_i32_1 = arith.constant 0 : i32
    return %c0_i32, %c0_i32_0 : i32, i32
  }
  func.func @transform_3(%arg0: i32) -> (i32, i32) {
    %c0_i32 = arith.constant 0 : i32
    %c0_i32_0 = arith.constant 0 : i32
    return %c0_i32, %arg0 : i32, i32
  }
}

</mosaic_0001>

<bundles_post_ra>
// kernel: tpu_custom_call.1
= control target key start
LH: loop header
LB: loop body
LE: loop exit
PB: predicated region body
PF: predicated region fallthrough
CT: control target
= control target key end

     0   :  { %8 = vsyncpa [#allocation3], 0  ;;  %s5741_s0 = inlined_call_operand.hbm [shape: f32[512,128], index: 0, kind: input, shape index: {}]   ;;  %s5742_s1 = inlined_call_operand.vmem [shape: f32[1,128], index: 1, kind: input, shape index: {}]   ;;  %s5743_s2 = inlined_call_operand.vmem [shape: f32[1,128], index: 2, kind: input, shape index: {}]   ;;  %s5744_s3 = inlined_call_operand.hbm [shape: f32[1,512], index: 3, kind: output, shape index: {}]  }
   0x1   :  { %10 = vsyncpa [#allocation3 + $0x1], 0 }
   0x2   :  { %11 = vsyncpa [#allocation4], 0 }
   0x3   :  { %13 = vsyncpa [#allocation4 + $0x1], 0  ;;  %s4083_s12 = smov 0   ;;  %s4085_s13 = smov 0  }
   0x4   :  { %s4087_s14 = smov 0   ;;  %s4089_s15 = smov 0  }
   0x5 LB: > { %s4104_s16 = sadd.s32 4294967295, %s4055_s15   ;;  %s3829_s17 = sadd.s32 4294967294, %s4055_s15   ;;  %s4055_s15 = sphi %s4089_s15, %s5768_s15   ;;  %s4051_s14 = sphi %s4087_s14, %s5767_s14   ;;  %s4047_s13 = sphi %s4085_s13, %s5766_s13   ;;  %s4043_s12 = sphi %s4083_s12, %s5765_s12  }
   0x6   : > { %s4108_s18 = sadd.s32 1, %s4055_s15   ;;  %s26_s19 = sadd.s32 1, %s4051_s14 }
   0x7   : > { %s23_s20 = ssub.s32 %s4055_s15, %s4108_s18  ;;  %p33_p0 = scmp.ne.s32.totalorder %s4051_s14, %s4047_s13 }
   0x8   : > { %p24_p1 = scmp.eq.s32.totalorder %s23_s20, 0  ;;  %p34_p2 = scmp.eq.s32.totalorder %s4055_s15, 0 }
   0x9   : > { %p39_p3 = scmp.ne.s32.totalorder %s4047_s13, %s4043_s12  ;;  %p40_p4 = scmp.eq.s32.totalorder %s4104_s16, 0 }
   0xa   : > { %s4120_s21 = scalar_select %p24_p1, %s4051_s14, %s26_s19  }
   0xb   : > { %p4122_p5 = por %p34_p2, %p33_p0  ;;  %p4126_p6 = por %p40_p4, %p39_p3 }
   0xc   : > { %p105_p7 = scmp.eq.s32.totalorder %s4104_s16, 1  ;;  %p111_p8 = scmp.eq.s32.totalorder %s3829_s17, 1 }
   0xd   : > { %s5752_s23 = scalar_select %p4126_p6, 1, 0 }
   0xe   : > { %p3859_p10 = scmp.lt.s32.totalorder %s4055_s15, 2  ;;  %p4133_p11 = por %p105_p7, %p33_p0 }
   0xf   : > { %p4137_p12 = por %p111_p8, %p39_p3  ;;  %s137_s26 = sand.u32 1, %s4051_s14  }
  0x10   : > { %s5753_s24 = scalar_select %p4133_p11, 1, 0 }
  0x11   : > { %s5754_s25 = scalar_select %p4137_p12, 1, 0 }
  0x12   : > { %s3845_s27 = sshll.u32 %s4055_s15, 12  ;;  %s3832_s28 = sshll.u32 %s137_s26, 8 }
  0x13   : > { %s4146_s4 = scalar_lea.hbm %s5741_s0, %s3845_s27  ;;  %s141_s5 = scalar_lea.vmem [#allocation2], %s3832_s28 }
  0x14   : > { %s148_s6 = sshll.u32 %s141_s5, 4  ;;  %p4150_p13 = pnand %p3859_p10, %p4122_p5  ;;  %s4154_s6 = int_to_ptr.vmem [resolvable:$true] %s148_s6 }
  0x15   : > { %s4156_s8 = scalar_lea.sflag [#allocation3], %s137_s26  ;;  %s3963_s9 = scalar_lea.hbm %s4146_s4, 4096 }
  0x16   : > { %p3964_p0 = scmp.ne.s32.totalorder %s4146_s4, %s3963_s9  ;;  %p3965_p1 = pneg %p4150_p13 }
  0x17   : > { %s3968_s17 = scalar_lea.hbm %s5741_s0, 8192  ;;  %p3969_p4 = scmp.lt.s32.totalorder %s4146_s4, %s5741_s0 }
  0x18   : > { %p3966_p2 = pnand %p3965_p1, %p3964_p0  ;;  %p3970_p5 = scmp.lt.s32.totalorder %s3968_s17, %s3963_s9 }
  0x1a   : > { %p3967_p3 = pneg %p3966_p2  ;;  %p3971_p7 = por %p3970_p5, %p3969_p4 }
  0x1c   : > { %p3972_p8 = pnand %p3971_p7, %p3967_p3 }
  0x1e   : > { %3975 = shalt.err (!%p3972_p8)
}
  0x1f   : > { %s3976_s22 = scalar_lea.vmem %s4154_s6, 4096  ;;  %s4057_s26 = smov [#allocation2]  }
  0x20   : > { %p3977_p10 = scmp.ne.s32.totalorder %s4154_s6, %s3976_s22  ;;  %s3981_s27 = sshll.u32 %s4057_s26, 4  ;;  %s3982_s27 = int_to_ptr.vmem [resolvable:$false] %s3981_s27 }
  0x21   : > { %s3983_s28 = scalar_lea.vmem %s3982_s27, 8192  ;;  %p3984_p2 = scmp.lt.s32.totalorder %s4154_s6, %s3982_s27 }
  0x22   : > { %p3979_p9 = pnand %p3977_p10, %p3965_p1  ;;  %p3985_p12 = scmp.lt.s32.totalorder %s3983_s28, %s3976_s22 }
  0x24   : > { %p3980_p0 = pneg %p3979_p9  ;;  %p3986_p11 = por %p3985_p12, %p3984_p2 }
  0x26   : > { %p3987_p6 = pnand %p3986_p11, %p3980_p0 }
  0x28   : > { %3990 = shalt.err (!%p3987_p6)
}
  0x29   : > { %s4058_s29 = smov 128   ;;  %s4059_s30 = smov 8  }
  0x2a   : > { %3854 = dma.hbm_to_vmem [thread:$0]  (!%p4150_p13), %s4146_s4, 4096, %s4154_s6, %s4156_s8, %s4058_s29, %s4058_s29, %s4059_s30  }
  0x2b   : > { %p3835_p9 = scmp.ge.s32.totalorder %s4055_s15, 1  ;;  %p156_p1 = scmp.lt.s32.totalorder %s4055_s15, 3 }
  0x2d   : > { %p157_p3 = pnand %p3835_p9, %p156_p1 }
  0x2f   : > { %160 = sbr.rel (%p157_p3) target bundleno = 778 (0x30a), region = 32 }
  0x34   : > { %s4180_s5 = sand.u32 1, %s4047_s13   ;;  %p5756_p6 = scmp.ne.s32.totalorder %s5752_s23, 0 }
  0x35   : > { %s3836_s9 = sshll.u32 %s4180_s5, 8  ;;  %s163_s10 = scalar_lea.sflag [#allocation3], %s4180_s5 }
  0x36   : > { %s4184_s11 = scalar_lea.vmem [#allocation2], %s3836_s9 }
  0x37   : > { %4034 = dma.done.wait (%p5756_p6), %s163_s10, 4096  }
  0x38   : > { %4036 = vsyncadd (%p5756_p6), %s163_s10, 4294963200  ;;  %v4191_v0 = vld [vmem:[%s4184_s11] sm:$0xff]  ;;  %v4194_v1 = vld [vmem:[%s4184_s11 + $0x10] sm:$0xff]  ;;  %vm3544_vm0 = vcmask 130112   ;;  %vm3551_vm1 = vcmask 195712   ;;  %vm3558_vm2 = vcmask 261312  }
  0x39   : > { %v4197_v2 = vld [vmem:[%s4184_s11 + $0x8] sm:$0xff]  ;;  %v223_v3 = vmul.f32 %v4191_v0, %v4191_v0  ;;  %v225_v4 = vmul.f32 %v4194_v1, %v4194_v1  ;;  %v4204_v5 = vld [vmem:[%s4184_s11 + $0x18] sm:$0xff]  ;;  %v4211_v8 = vld [vmem:[%s4184_s11 + $0x20] sm:$0xff]  ;;  %vm3565_vm3 = vcmask 326912   ;;  %vm3572_vm4 = vcmask 392512   ;;  %s3837_s8 = sshll.u32 %s4180_s5, 1 }
  0x3a   : > { %v224_v6 = vmul.f32 %v4197_v2, %v4197_v2  ;;  %v226_v7 = vmul.f32 %v4204_v5, %v4204_v5  ;;  %v4214_v9 = vld [vmem:[%s4184_s11 + $0x28] sm:$0xff]  ;;  %v227_v10 = vmul.f32 %v4211_v8, %v4211_v8  ;;  %v4221_v12 = vld [vmem:[%s4184_s11 + $0x30] sm:$0xff]  ;;  %v4224_v13 = vld [vmem:[%s4184_s11 + $0x38] sm:$0xff]  ;;  %vm3579_vm5 = vcmask 458112   ;;  %s3846_s17 = sshll.u32 %s4104_s16, 5  ;;  %s188_s19 = scalar_lea.vmem [#allocation5], %s3837_s8 }
  0x3b   : > { %255 = vadd.xlane.f32.xlu0 %v223_v3  ;;  %259 = vadd.xlane.f32.xlu1 %v225_v4  ;;  %v228_v11 = vmul.f32 %v4214_v9, %v4214_v9  ;;  %v229_v14 = vmul.f32 %v4221_v12, %v4221_v12  ;;  %v230_v15 = vmul.f32 %v4224_v13, %v4224_v13  ;;  %v4231_v16 = vld [vmem:[%s4184_s11 + $0x40] sm:$0xff]  ;;  %v4234_v17 = vld [vmem:[%s4184_s11 + $0x48] sm:$0xff]  ;;  %v4241_v20 = vld [vmem:[%s4184_s11 + $0x50] sm:$0xff]  ;;  %vm3586_vm6 = vcmask 523712   ;;  %s3759_s20 = sshll.u32 %s188_s19, 4  ;;  %s3757_s27 = scalar_lea.hbm %s5744_s3, %s3846_s17  ;;  %s3760_s20 = int_to_ptr.vmem [resolvable:$true] %s3759_s20 }
  0x3c   : > { %v231_v18 = vmul.f32 %v4231_v16, %v4231_v16  ;;  %v232_v19 = vmul.f32 %v4234_v17, %v4234_v17  ;;  %v4244_v21 = vld [vmem:[%s4184_s11 + $0x58] sm:$0xff]  ;;  %v233_v22 = vmul.f32 %v4241_v20, %v4241_v20  ;;  %v4251_v24 = vld [vmem:[%s4184_s11 + $0x60] sm:$0xff]  ;;  %v4254_v25 = vld [vmem:[%s4184_s11 + $0x68] sm:$0xff]  ;;  %vm3593_vm7 = vcmask 589312   ;;  %s3745_s28 = scalar_lea.sflag [#allocation4], %s4180_s5  ;;  %s3991_s29 = scalar_lea.vmem %s3760_s20, 32 }
  0x3d   : > { %v234_v23 = vmul.f32 %v4244_v21, %v4244_v21  ;;  %v235_v26 = vmul.f32 %v4251_v24, %v4251_v24  ;;  %v236_v27 = vmul.f32 %v4254_v25, %v4254_v25  ;;  %v4261_v28 = vld [vmem:[%s4184_s11 + $0x70] sm:$0xff]  ;;  %v4264_v29 = vld [vmem:[%s4184_s11 + $0x78] sm:$0xff]  ;;  %v4271_v32 = vld [vmem:[%s4184_s11 + $0x80] sm:$0xff]  ;;  %vm3600_vm8 = vcmask 654912   ;;  %p3992_p11 = scmp.ne.s32.totalorder %s3760_s20, %s3991_s29  ;;  %p5762_p12 = scmp.ne.s32.totalorder %s5753_s24, 0 }
  0x3e   : > { %v237_v30 = vmul.f32 %v4261_v28, %v4261_v28  ;;  %v238_v31 = vmul.f32 %v4264_v29, %v4264_v29  ;;  %v4274_v33 = vld [vmem:[%s4184_s11 + $0x88] sm:$0xff]  ;;  %v239_v34 = vmul.f32 %v4271_v32, %v4271_v32  ;;  %v4281_v36 = vld [vmem:[%s4184_s11 + $0x90] sm:$0xff]  ;;  %v4284_v37 = vld [vmem:[%s4184_s11 + $0x98] sm:$0xff]  ;;  %vm3607_vm9 = vcmask 720512   ;;  %s4062_s16 = smov [#allocation5]  }
  0x3f   : > { %257 = vadd.xlane.f32.xlu0 %v224_v6  ;;  %261 = vadd.xlane.f32.xlu1 %v226_v7  ;;  %v240_v35 = vmul.f32 %v4274_v33, %v4274_v33  ;;  %v241_v38 = vmul.f32 %v4281_v36, %v4281_v36  ;;  %v242_v39 = vmul.f32 %v4284_v37, %v4284_v37  ;;  %v4291_v40 = vld [vmem:[%s4184_s11 + $0xa0] sm:$0xff]  ;;  %v4294_v41 = vld [vmem:[%s4184_s11 + $0xa8] sm:$0xff]  ;;  %v4301_v44 = vld [vmem:[%s4184_s11 + $0xb0] sm:$0xff]  ;;  %vm3614_vm10 = vcmask 786112   ;;  %p3993_p13 = pnand %p3992_p11, %p5762_p12  ;;  %s3995_s30 = sshll.u32 %s4062_s16, 4  ;;  %s3996_s30 = int_to_ptr.vmem [resolvable:$false] %s3995_s30 }
  0x40   : > { %v243_v42 = vmul.f32 %v4291_v40, %v4291_v40  ;;  %v244_v43 = vmul.f32 %v4294_v41, %v4294_v41  ;;  %v4304_v45 = vld [vmem:[%s4184_s11 + $0xb8] sm:$0xff]  ;;  %v245_v46 = vmul.f32 %v4301_v44, %v4301_v44  ;;  %v4311_v48 = vld [vmem:[%s4184_s11 + $0xc0] sm:$0xff]  ;;  %v4314_v49 = vld [vmem:[%s4184_s11 + $0xc8] sm:$0xff]  ;;  %vm3621_vm11 = vcmask 851712   ;;  %s3997_s9 = scalar_lea.vmem %s3996_s30, 64  ;;  %p3998_p5 = scmp.lt.s32.totalorder %s3760_s20, %s3996_s30 }
  0x41   : > { %v246_v47 = vmul.f32 %v4304_v45, %v4304_v45  ;;  %v247_v50 = vmul.f32 %v4311_v48, %v4311_v48  ;;  %v248_v51 = vmul.f32 %v4314_v49, %v4314_v49  ;;  %v4321_v52 = vld [vmem:[%s4184_s11 + $0xd0] sm:$0xff]  ;;  %v4324_v53 = vld [vmem:[%s4184_s11 + $0xd8] sm:$0xff]  ;;  %v4331_v56 = vld [vmem:[%s4184_s11 + $0xe0] sm:$0xff]  ;;  %vm3628_vm12 = vcmask 917312   ;;  %p3994_p4 = pneg %p3993_p13  ;;  %p3999_p7 = scmp.lt.s32.totalorder %s3997_s9, %s3991_s29 }
  0x42   : > { %v249_v54 = vmul.f32 %v4321_v52, %v4321_v52  ;;  %v250_v55 = vmul.f32 %v4324_v53, %v4324_v53  ;;  %v4334_v57 = vld [vmem:[%s4184_s11 + $0xe8] sm:$0xff]  ;;  %v251_v58 = vmul.f32 %v4331_v56, %v4331_v56  ;;  %v4341_v60 = vld [vmem:[%s4184_s11 + $0xf0] sm:$0xff]  ;;  %v4344_v61 = vld [vmem:[%s4184_s11 + $0xf8] sm:$0xff]  ;;  %vm3635_vm13 = vcmask 982912  }
  0x43   : > { %263 = vadd.xlane.f32.xlu0 %v227_v10  ;;  %265 = vadd.xlane.f32.xlu1 %v228_v11  ;;  %v252_v59 = vmul.f32 %v4334_v57, %v4334_v57  ;;  %v253_v62 = vmul.f32 %v4341_v60, %v4341_v60  ;;  %v254_v63 = vmul.f32 %v4344_v61, %v4344_v61  ;;  %vm3642_vm14 = vcmask 1048512   ;;  %p4000_p8 = por %p3999_p7, %p3998_p5 }
  0x45   : > { %p4001_p10 = pnand %p4000_p8, %p3994_p4 }
  0x47   : > { %267 = vadd.xlane.f32.xlu0 %v229_v14  ;;  %269 = vadd.xlane.f32.xlu1 %v230_v15 }
  0x4b   : > { %271 = vadd.xlane.f32.xlu0 %v231_v18  ;;  %273 = vadd.xlane.f32.xlu1 %v232_v19  ;;  %v4353_v19 = vld [vmem:[%s5742_s1] ss:$0 sm:$0xff] }
  0x4f   : > { %275 = vadd.xlane.f32.xlu0 %v233_v22  ;;  %277 = vadd.xlane.f32.xlu1 %v234_v23 }
  0x53   : > { %279 = vadd.xlane.f32.xlu0 %v235_v26  ;;  %281 = vadd.xlane.f32.xlu1 %v236_v27 }
  0x57   : > { %283 = vadd.xlane.f32.xlu0 %v237_v30  ;;  %285 = vadd.xlane.f32.xlu1 %v238_v31  ;;  %v4359_v30 = vld [vmem:[%s5743_s2] ss:$0 sm:$0xff] }
  0x5b   : > { %287 = vadd.xlane.f32.xlu0 %v239_v34  ;;  %289 = vadd.xlane.f32.xlu1 %v240_v35 }
  0x5f   : > { %291 = vadd.xlane.f32.xlu0 %v241_v38  ;;  %293 = vadd.xlane.f32.xlu1 %v242_v39 }
  0x63   : > { %295 = vadd.xlane.f32.xlu0 %v243_v42  ;;  %297 = vadd.xlane.f32.xlu1 %v244_v43 }
  0x67   : > { %299 = vadd.xlane.f32.xlu0 %v245_v46  ;;  %301 = vadd.xlane.f32.xlu1 %v246_v47 }
  0x6b   : > { %303 = vadd.xlane.f32.xlu0 %v247_v50  ;;  %305 = vadd.xlane.f32.xlu1 %v248_v51 }
  0x6f   : > { %307 = vadd.xlane.f32.xlu0 %v249_v54  ;;  %309 = vadd.xlane.f32.xlu1 %v250_v55 }
  0x73   : > { %311 = vadd.xlane.f32.xlu0 %v251_v58  ;;  %313 = vadd.xlane.f32.xlu1 %v252_v59 }
  0x77   : > { %315 = vadd.xlane.f32.xlu0 %v253_v62  ;;  %317 = vadd.xlane.f32.xlu1 %v254_v63 }
  0xc4   : > { %v256_v3 = vpop.xlane.xlu0 %255  ;;  %v260_v4 = vpop.xlane.xlu1 %259 }
  0xc5   : > { %3899 = vrsqrt.f32 %v256_v3 }
  0xc6   : > { %3901 = vrsqrt.f32 %v260_v4 }
  0xc8   : > { %v258_v6 = vpop.xlane.xlu0 %257  ;;  %v262_v7 = vpop.xlane.xlu1 %261 }
  0xc9   : > { %3903 = vrsqrt.f32 %v258_v6 }
  0xca   : > { %3905 = vrsqrt.f32 %v262_v7 }
  0xcc   : > { %v264_v10 = vpop.xlane.xlu0 %263  ;;  %v266_v11 = vpop.xlane.xlu1 %265 }
  0xcd   : > { %3907 = vrsqrt.f32 %v264_v10 }
  0xce   : > { %3909 = vrsqrt.f32 %v266_v11 }
  0xd0   : > { %v268_v14 = vpop.xlane.xlu0 %267  ;;  %v270_v15 = vpop.xlane.xlu1 %269 }
  0xd1   : > { %3911 = vrsqrt.f32 %v268_v14 }
  0xd2   : > { %v3900_v18 = vpop.eup %3899  ;;  %3913 = vrsqrt.f32 %v270_v15 }
  0xd3   : > { %v3902_v22 = vpop.eup %3901  ;;  %v351_v23 = vmul.f32 %v3900_v18, %v4191_v0 }
  0xd4   : > { %v272_v26 = vpop.xlane.xlu0 %271  ;;  %v274_v27 = vpop.xlane.xlu1 %273  ;;  %v353_v31 = vmul.f32 %v3902_v22, %v4194_v1 }
  0xd5   : > { %3915 = vrsqrt.f32 %v272_v26  ;;  %v4363_v34 = vsub.f32 %v351_v23, %v4353_v19 }
  0xd6   : > { %v3904_v35 = vpop.eup %3903  ;;  %3917 = vrsqrt.f32 %v274_v27  ;;  %v4366_v38 = vsub.f32 %v353_v31, %v4353_v19 }
  0xd7   : > { %v3906_v39 = vpop.eup %3905  ;;  %v429_v0 = vmul.f32 %v4359_v30, %v4363_v34  ;;  %v352_v42 = vmul.f32 %v3904_v35, %v4197_v2 }
  0xd8   : > { %v276_v43 = vpop.xlane.xlu0 %275  ;;  %v278_v46 = vpop.xlane.xlu1 %277  ;;  %v354_v47 = vmul.f32 %v3906_v39, %v4204_v5  ;;  %v431_v1 = vmul.f32 %v4359_v30, %v4366_v38 }
  0xd9   : > { %3919 = vrsqrt.f32 %v276_v43  ;;  %461 = vadd.xlane.f32.xlu0 %v429_v0  ;;  %v4375_v50 = vsub.f32 %v352_v42, %v4353_v19 }
  0xda   : > { %v3908_v51 = vpop.eup %3907  ;;  %3921 = vrsqrt.f32 %v278_v46  ;;  %v4378_v54 = vsub.f32 %v354_v47, %v4353_v19 }
  0xdb   : > { %v3910_v55 = vpop.eup %3909  ;;  %v430_v2 = vmul.f32 %v4359_v30, %v4375_v50  ;;  %v355_v58 = vmul.f32 %v3908_v51, %v4211_v8 }
  0xdc   : > { %v280_v5 = vpop.xlane.xlu0 %279  ;;  %v282_v59 = vpop.xlane.xlu1 %281  ;;  %v356_v62 = vmul.f32 %v3910_v55, %v4214_v9  ;;  %v432_v63 = vmul.f32 %v4359_v30, %v4378_v54 }
  0xdd   : > { %3923 = vrsqrt.f32 %v280_v5  ;;  %465 = vadd.xlane.f32.xlu0 %v431_v1  ;;  %463 = vadd.xlane.f32.xlu1 %v430_v2  ;;  %v4387_v3 = vsub.f32 %v355_v58, %v4353_v19 }
  0xde   : > { %v3912_v4 = vpop.eup %3911  ;;  %3925 = vrsqrt.f32 %v282_v59  ;;  %v4390_v6 = vsub.f32 %v356_v62, %v4353_v19 }
  0xdf   : > { %v3914_v7 = vpop.eup %3913  ;;  %v433_v8 = vmul.f32 %v4359_v30, %v4387_v3  ;;  %v357_v9 = vmul.f32 %v3912_v4, %v4221_v12 }
  0xe0   : > { %v284_v10 = vpop.xlane.xlu0 %283  ;;  %v286_v11 = vpop.xlane.xlu1 %285  ;;  %v358_v14 = vmul.f32 %v3914_v7, %v4224_v13  ;;  %v434_v15 = vmul.f32 %v4359_v30, %v4390_v6 }
  0xe1   : > { %3927 = vrsqrt.f32 %v284_v10  ;;  %467 = vadd.xlane.f32.xlu1 %v432_v63  ;;  %469 = vadd.xlane.f32.xlu0 %v433_v8  ;;  %v4399_v18 = vsub.f32 %v357_v9, %v4353_v19 }
  0xe2   : > { %v3916_v22 = vpop.eup %3915  ;;  %3929 = vrsqrt.f32 %v286_v11  ;;  %v4402_v23 = vsub.f32 %v358_v14, %v4353_v19 }
  0xe3   : > { %v3918_v26 = vpop.eup %3917  ;;  %v435_v12 = vmul.f32 %v4359_v30, %v4399_v18  ;;  %v359_v13 = vmul.f32 %v3916_v22, %v4231_v16 }
  0xe4   : > { %v288_v27 = vpop.xlane.xlu0 %287  ;;  %v290_v31 = vpop.xlane.xlu1 %289  ;;  %v360_v35 = vmul.f32 %v3918_v26, %v4234_v17  ;;  %v436_v39 = vmul.f32 %v4359_v30, %v4402_v23 }
  0xe5   : > { %3931 = vrsqrt.f32 %v288_v27  ;;  %471 = vadd.xlane.f32.xlu1 %v434_v15  ;;  %473 = vadd.xlane.f32.xlu0 %v435_v12  ;;  %v4411_v0 = vsub.f32 %v359_v13, %v4353_v19 }
  0xe6   : > { %v3920_v42 = vpop.eup %3919  ;;  %3933 = vrsqrt.f32 %v290_v31  ;;  %v4414_v43 = vsub.f32 %v360_v35, %v4353_v19 }
  0xe7   : > { %v3922_v46 = vpop.eup %3921  ;;  %v437_v16 = vmul.f32 %v4359_v30, %v4411_v0  ;;  %v361_v17 = vmul.f32 %v3920_v42, %v4241_v20 }
  0xe8   : > { %v292_v47 = vpop.xlane.xlu0 %291  ;;  %v294_v1 = vpop.xlane.xlu1 %293  ;;  %v362_v51 = vmul.f32 %v3922_v46, %v4244_v21  ;;  %v438_v55 = vmul.f32 %v4359_v30, %v4414_v43 }
  0xe9   : > { %3935 = vrsqrt.f32 %v292_v47  ;;  %475 = vadd.xlane.f32.xlu1 %v436_v39  ;;  %477 = vadd.xlane.f32.xlu0 %v437_v16  ;;  %v4423_v2 = vsub.f32 %v361_v17, %v4353_v19 }
  0xea   : > { %v3924_v58 = vpop.eup %3923  ;;  %3937 = vrsqrt.f32 %v294_v1  ;;  %v4426_v5 = vsub.f32 %v362_v51, %v4353_v19 }
  0xeb   : > { %v3926_v59 = vpop.eup %3925  ;;  %v439_v20 = vmul.f32 %v4359_v30, %v4423_v2  ;;  %v363_v21 = vmul.f32 %v3924_v58, %v4251_v24 }
  0xec   : > { %v296_v62 = vpop.xlane.xlu0 %295  ;;  %v298_v63 = vpop.xlane.xlu1 %297  ;;  %v364_v4 = vmul.f32 %v3926_v59, %v4254_v25  ;;  %v440_v7 = vmul.f32 %v4359_v30, %v4426_v5 }
  0xed   : > { %3939 = vrsqrt.f32 %v296_v62  ;;  %479 = vadd.xlane.f32.xlu1 %v438_v55  ;;  %481 = vadd.xlane.f32.xlu0 %v439_v20  ;;  %v4435_v8 = vsub.f32 %v363_v21, %v4353_v19 }
  0xee   : > { %v3928_v9 = vpop.eup %3927  ;;  %3941 = vrsqrt.f32 %v298_v63  ;;  %v4438_v10 = vsub.f32 %v364_v4, %v4353_v19 }
  0xef   : > { %v3930_v11 = vpop.eup %3929  ;;  %v441_v24 = vmul.f32 %v4359_v30, %v4435_v8  ;;  %v365_v25 = vmul.f32 %v3928_v9, %v4261_v28 }
  0xf0   : > { %v300_v14 = vpop.xlane.xlu0 %299  ;;  %v302_v15 = vpop.xlane.xlu1 %301  ;;  %v366_v22 = vmul.f32 %v3930_v11, %v4264_v29  ;;  %v442_v26 = vmul.f32 %v4359_v30, %v4438_v10 }
  0xf1   : > { %3943 = vrsqrt.f32 %v300_v14  ;;  %483 = vadd.xlane.f32.xlu1 %v440_v7  ;;  %485 = vadd.xlane.f32.xlu0 %v441_v24  ;;  %v4447_v12 = vsub.f32 %v365_v25, %v4353_v19 }
  0xf2   : > { %v3932_v13 = vpop.eup %3931  ;;  %3945 = vrsqrt.f32 %v302_v15  ;;  %v4450_v27 = vsub.f32 %v366_v22, %v4353_v19 }
  0xf3   : > { %v3934_v31 = vpop.eup %3933  ;;  %v443_v28 = vmul.f32 %v4359_v30, %v4447_v12  ;;  %v367_v29 = vmul.f32 %v3932_v13, %v4271_v32 }
  0xf4   : > { %v304_v35 = vpop.xlane.xlu0 %303  ;;  %v306_v39 = vpop.xlane.xlu1 %305  ;;  %v368_v42 = vmul.f32 %v3934_v31, %v4274_v33  ;;  %v444_v46 = vmul.f32 %v4359_v30, %v4450_v27 }
  0xf5   : > { %3947 = vrsqrt.f32 %v304_v35  ;;  %487 = vadd.xlane.f32.xlu1 %v442_v26  ;;  %489 = vadd.xlane.f32.xlu0 %v443_v28  ;;  %v4459_v16 = vsub.f32 %v367_v29, %v4353_v19 }
  0xf6   : > { %v3936_v17 = vpop.eup %3935  ;;  %3949 = vrsqrt.f32 %v306_v39  ;;  %v4462_v47 = vsub.f32 %v368_v42, %v4353_v19 }
  0xf7   : > { %v3938_v1 = vpop.eup %3937  ;;  %v445_v32 = vmul.f32 %v4359_v30, %v4459_v16  ;;  %v369_v33 = vmul.f32 %v3936_v17, %v4281_v36 }
  0xf8   : > { %v308_v51 = vpop.xlane.xlu0 %307  ;;  %v310_v55 = vpop.xlane.xlu1 %309  ;;  %v370_v58 = vmul.f32 %v3938_v1, %v4284_v37  ;;  %v446_v59 = vmul.f32 %v4359_v30, %v4462_v47 }
  0xf9   : > { %3951 = vrsqrt.f32 %v308_v51  ;;  %491 = vadd.xlane.f32.xlu1 %v444_v46  ;;  %493 = vadd.xlane.f32.xlu0 %v445_v32  ;;  %v4471_v20 = vsub.f32 %v369_v33, %v4353_v19 }
  0xfa   : > { %v3940_v21 = vpop.eup %3939  ;;  %3953 = vrsqrt.f32 %v310_v55  ;;  %v4474_v62 = vsub.f32 %v370_v58, %v4353_v19 }
  0xfb   : > { %v3942_v63 = vpop.eup %3941  ;;  %v447_v36 = vmul.f32 %v4359_v30, %v4471_v20  ;;  %v371_v37 = vmul.f32 %v3940_v21, %v4291_v40 }
  0xfc   : > { %v312_v4 = vpop.xlane.xlu0 %311  ;;  %v314_v7 = vpop.xlane.xlu1 %313  ;;  %v372_v9 = vmul.f32 %v3942_v63, %v4294_v41  ;;  %v448_v11 = vmul.f32 %v4359_v30, %v4474_v62 }
  0xfd   : > { %3955 = vrsqrt.f32 %v312_v4  ;;  %495 = vadd.xlane.f32.xlu1 %v446_v59  ;;  %497 = vadd.xlane.f32.xlu0 %v447_v36  ;;  %v4483_v24 = vsub.f32 %v371_v37, %v4353_v19 }
  0xfe   : > { %v3944_v25 = vpop.eup %3943  ;;  %3957 = vrsqrt.f32 %v314_v7  ;;  %v4486_v14 = vsub.f32 %v372_v9, %v4353_v19 }
  0xff   : > { %v3946_v15 = vpop.eup %3945  ;;  %v449_v40 = vmul.f32 %v4359_v30, %v4483_v24  ;;  %v373_v41 = vmul.f32 %v3944_v25, %v4301_v44 }
 0x100   : > { %v316_v22 = vpop.xlane.xlu0 %315  ;;  %v318_v26 = vpop.xlane.xlu1 %317  ;;  %v374_v13 = vmul.f32 %v3946_v15, %v4304_v45  ;;  %v450_v31 = vmul.f32 %v4359_v30, %v4486_v14 }
 0x101   : > { %3959 = vrsqrt.f32 %v316_v22  ;;  %499 = vadd.xlane.f32.xlu1 %v448_v11  ;;  %501 = vadd.xlane.f32.xlu0 %v449_v40  ;;  %v4495_v28 = vsub.f32 %v373_v41, %v4353_v19 }
 0x102   : > { %v3948_v29 = vpop.eup %3947  ;;  %3961 = vrsqrt.f32 %v318_v26  ;;  %v4498_v35 = vsub.f32 %v374_v13, %v4353_v19  ;;  %v528_v13 = vmul.f32 %v4378_v54, %v4378_v54  ;;  %v534_v54 = vmul.f32 %v4414_v43, %v4414_v43 }
 0x103   : > { %v3950_v39 = vpop.eup %3949  ;;  %v451_v44 = vmul.f32 %v4359_v30, %v4495_v28  ;;  %v375_v45 = vmul.f32 %v3948_v29, %v4311_v48  ;;  %v4060_v43 = vmov 0   ;;  %v545_v29 = vmul.f32 %v4483_v24, %v4483_v24 }
 0x104   : > { %v376_v42 = vmul.f32 %v3950_v39, %v4314_v49  ;;  %v452_v46 = vmul.f32 %v4359_v30, %v4498_v35  ;;  %3897 = vset.pattern.permute.xlu0 %v4060_v43  ;;  %3898 = vset.pattern.permute.xlu1 %v4060_v43 }
 0x105   : > { %503 = vadd.xlane.f32.xlu1 %v450_v31  ;;  %505 = vadd.xlane.f32.xlu0 %v451_v44  ;;  %v4507_v17 = vsub.f32 %v375_v45, %v4353_v19  ;;  %v531_v31 = vmul.f32 %v4399_v18, %v4399_v18  ;;  %v537_v18 = vmul.f32 %v4435_v8, %v4435_v8 }
 0x106   : > { %v3952_v1 = vpop.eup %3951  ;;  %v4510_v32 = vsub.f32 %v376_v42, %v4353_v19  ;;  %v542_v8 = vmul.f32 %v4462_v47, %v4462_v47  ;;  %v548_v47 = vmul.f32 %v4498_v35, %v4498_v35 }
 0x107   : > { %v3954_v33 = vpop.eup %3953  ;;  %v453_v51 = vmul.f32 %v4359_v30, %v4507_v17  ;;  %v377_v48 = vmul.f32 %v3952_v1, %v4321_v52 }
 0x108   : > { %v378_v49 = vmul.f32 %v3954_v33, %v4324_v53  ;;  %v454_v55 = vmul.f32 %v4359_v30, %v4510_v32 }
 0x109   : > { %507 = vadd.xlane.f32.xlu1 %v452_v46  ;;  %509 = vadd.xlane.f32.xlu0 %v453_v51  ;;  %v4519_v58 = vsub.f32 %v377_v48, %v4353_v19 }
 0x10a   : > { %v3956_v59 = vpop.eup %3955  ;;  %v4522_v21 = vsub.f32 %v378_v49, %v4353_v19 }
 0x10b   : > { %v3958_v63 = vpop.eup %3957  ;;  %v455_v36 = vmul.f32 %v4359_v30, %v4519_v58  ;;  %v379_v52 = vmul.f32 %v3956_v59, %v4331_v56  ;;  %v551_v24 = vmul.f32 %v4519_v58, %v4519_v58 }
 0x10c   : > { %v380_v53 = vmul.f32 %v3958_v63, %v4334_v57  ;;  %v456_v37 = vmul.f32 %v4359_v30, %v4522_v21 }
 0x10d   : > { %511 = vadd.xlane.f32.xlu1 %v454_v55  ;;  %513 = vadd.xlane.f32.xlu0 %v455_v36  ;;  %v4531_v4 = vsub.f32 %v379_v52, %v4353_v19 }
 0x10e   : > { %v3960_v7 = vpop.eup %3959  ;;  %v4534_v9 = vsub.f32 %v380_v53, %v4353_v19 }
 0x10f   : > { %v3962_v11 = vpop.eup %3961  ;;  %v457_v25 = vmul.f32 %v4359_v30, %v4531_v4  ;;  %v381_v56 = vmul.f32 %v3960_v7, %v4341_v60  ;;  %v525_v60 = vmul.f32 %v4363_v34, %v4363_v34  ;;  %v530_v34 = vmul.f32 %v4390_v6, %v4390_v6 }
 0x110   : > { %v382_v57 = vmul.f32 %v3962_v11, %v4344_v61  ;;  %v458_v15 = vmul.f32 %v4359_v30, %v4534_v9  ;;  %v526_v61 = vmul.f32 %v4375_v50, %v4375_v50  ;;  %v533_v50 = vmul.f32 %v4411_v0, %v4411_v0 }
 0x111   : > { %515 = vadd.xlane.f32.xlu1 %v456_v37  ;;  %517 = vadd.xlane.f32.xlu0 %v457_v25  ;;  %v4543_v40 = vsub.f32 %v381_v56, %v4353_v19  ;;  %v536_v6 = vmul.f32 %v4426_v5, %v4426_v5  ;;  %v539_v0 = vmul.f32 %v4447_v12, %v4447_v12  ;;  %v5747_v25 = vlaneseq }
 0x112   : > { %v4546_v41 = vsub.f32 %v382_v57, %v4353_v19  ;;  %v527_v19 = vmul.f32 %v4366_v38, %v4366_v38  ;;  %v532_v38 = vmul.f32 %v4402_v23, %v4402_v23  ;;  %v538_v23 = vmul.f32 %v4438_v10, %v4438_v10 }
 0x113   : > { %v459_v22 = vmul.f32 %v4359_v30, %v4543_v40  ;;  %v541_v5 = vmul.f32 %v4459_v16, %v4459_v16  ;;  %v543_v10 = vmul.f32 %v4471_v20, %v4471_v20  ;;  %v544_v12 = vmul.f32 %v4474_v62, %v4474_v62 }
 0x114   : > { %v460_v26 = vmul.f32 %v4359_v30, %v4546_v41  ;;  %v529_v30 = vmul.f32 %v4387_v3, %v4387_v3  ;;  %v535_v3 = vmul.f32 %v4423_v2, %v4423_v2  ;;  %v540_v2 = vmul.f32 %v4450_v27, %v4450_v27 }
 0x115   : > { %519 = vadd.xlane.f32.xlu1 %v458_v15  ;;  %521 = vadd.xlane.f32.xlu0 %v459_v22  ;;  %v546_v27 = vmul.f32 %v4486_v14, %v4486_v14  ;;  %v547_v16 = vmul.f32 %v4495_v28, %v4495_v28  ;;  %v549_v20 = vmul.f32 %v4507_v17, %v4507_v17  ;;  %v4061_v15 = vmov 1966171168  }
 0x116   : > { %v550_v62 = vmul.f32 %v4510_v32, %v4510_v32  ;;  %v552_v14 = vmul.f32 %v4522_v21, %v4522_v21  ;;  %v553_v28 = vmul.f32 %v4531_v4, %v4531_v4  ;;  %v554_v35 = vmul.f32 %v4534_v9, %v4534_v9 }
 0x117   : > { %v555_v39 = vmul.f32 %v4543_v40, %v4543_v40  ;;  %v556_v44 = vmul.f32 %v4546_v41, %v4546_v41  ;;  %v1874_v40 = vunpack.c.l.s4 %v4061_v15  ;;  %v4655_v41 = vshrl.u32 %v5747_v25, 7 }
 0x119   : > { %523 = vadd.xlane.f32.xlu1 %v460_v26  ;;  %557 = vadd.xlane.f32.xlu0 %v525_v60  ;;  %5757 = vst [vmem:[#allocation8_spill] sm:$0xff] %v4655_v41 }
 0x11d   : > { %559 = vadd.xlane.f32.xlu1 %v526_v61  ;;  %561 = vadd.xlane.f32.xlu0 %v527_v19  ;;  %v1875_v19 = vunpack.c.0.s8 %v1874_v40 }
 0x121   : > { %563 = vadd.xlane.f32.xlu1 %v528_v13  ;;  %565 = vadd.xlane.f32.xlu0 %v529_v30 }
 0x125   : > { %567 = vadd.xlane.f32.xlu1 %v530_v34  ;;  %569 = vadd.xlane.f32.xlu0 %v531_v31  ;;  %v4662_v34 = vsub.s32 0, %v4655_v41  ;;  %v4665_v31 = vsub.s32 1, %v4655_v41 }
 0x129   : > { %571 = vadd.xlane.f32.xlu1 %v532_v38  ;;  %573 = vadd.xlane.f32.xlu0 %v533_v50  ;;  %v4668_v38 = vsub.s32 2, %v4655_v41  ;;  %v4671_v50 = vsub.s32 3, %v4655_v41 }
 0x12d   : > { %575 = vadd.xlane.f32.xlu1 %v534_v54  ;;  %577 = vadd.xlane.f32.xlu0 %v535_v3  ;;  %v4674_v54 = vsub.s32 4, %v4655_v41 }
 0x131   : > { %579 = vadd.xlane.f32.xlu1 %v536_v6  ;;  %581 = vadd.xlane.f32.xlu0 %v537_v18  ;;  %v4677_v18 = vsub.s32 5, %v4655_v41 }
 0x135   : > { %583 = vadd.xlane.f32.xlu1 %v538_v23  ;;  %585 = vadd.xlane.f32.xlu0 %v539_v0  ;;  %v4680_v23 = vsub.s32 6, %v4655_v41 }
 0x139   : > { %587 = vadd.xlane.f32.xlu1 %v540_v2  ;;  %589 = vadd.xlane.f32.xlu0 %v541_v5 }
 0x13d   : > { %591 = vadd.xlane.f32.xlu1 %v542_v8  ;;  %593 = vadd.xlane.f32.xlu0 %v543_v10  ;;  %v4689_v8 = vsub.s32 7, %v4655_v41  ;;  %v4692_v10 = vsub.s32 %v1875_v19, %v4655_v41 }
 0x141   : > { %595 = vadd.xlane.f32.xlu1 %v544_v12  ;;  %597 = vadd.xlane.f32.xlu0 %v545_v29 }
 0x145   : > { %599 = vadd.xlane.f32.xlu1 %v546_v27  ;;  %601 = vadd.xlane.f32.xlu0 %v547_v16 }
 0x149   : > { %603 = vadd.xlane.f32.xlu1 %v548_v47  ;;  %605 = vadd.xlane.f32.xlu0 %v549_v20 }
 0x14d   : > { %607 = vadd.xlane.f32.xlu1 %v550_v62  ;;  %609 = vadd.xlane.f32.xlu0 %v551_v24 }
 0x151   : > { %611 = vadd.xlane.f32.xlu1 %v552_v14  ;;  %613 = vadd.xlane.f32.xlu0 %v553_v28 }
 0x155   : > { %615 = vadd.xlane.f32.xlu1 %v554_v35  ;;  %617 = vadd.xlane.f32.xlu0 %v555_v39 }
 0x159   : > { %619 = vadd.xlane.f32.xlu1 %v556_v44 }
 0x162   : > { %v462_v45 = vpop.xlane.xlu0 %461 }
 0x163   : > { %v621_v22 = vmul.f32 0.75, %v462_v45 }
 0x165   : > { %v653_v0 = vmul.f32 %v621_v22, %v462_v45 }
 0x166   : > { %v464_v42 = vpop.xlane.xlu1 %463  ;;  %v466_v46 = vpop.xlane.xlu0 %465 }
 0x167   : > { %v622_v26 = vmul.f32 0.75, %v464_v42  ;;  %v623_v13 = vmul.f32 0.75, %v466_v46 }
 0x169   : > { %v4682_v43 = vmul.f32 %v622_v26, %v464_v42  ;;  %v4694_v12 = vmul.f32 %v623_v13, %v466_v46 }
 0x16a   : > { %v468_v17 = vpop.xlane.xlu1 %467  ;;  %v470_v1 = vpop.xlane.xlu0 %469 }
 0x16b   : > { %v624_v30 = vmul.f32 0.75, %v468_v17  ;;  %v625_v3 = vmul.f32 0.75, %v470_v1 }
 0x16d   : > { %v4696_v29 = vmul.f32 %v624_v30, %v468_v17  ;;  %v4704_v14 = vmul.f32 %v625_v3, %v470_v1 }
 0x16e   : > { %v472_v32 = vpop.xlane.xlu1 %471  ;;  %v4616_v33 = vpop.xlane.xlu0 %473 }
 0x16f   : > { %v626_v6 = vmul.f32 0.75, %v472_v32  ;;  %v627_v27 = vmul.f32 0.75, %v4616_v33 }
 0x171   : > { %v4706_v28 = vmul.f32 %v626_v6, %v472_v32  ;;  %v4715_v40 = vmul.f32 %v627_v27, %v4616_v33 }
 0x172   : > { %v4618_v51 = vpop.xlane.xlu1 %475  ;;  %v4620_v48 = vpop.xlane.xlu0 %477 }
 0x173   : > { %v628_v16 = vmul.f32 0.75, %v4618_v51  ;;  %v629_v47 = vmul.f32 0.75, %v4620_v48 }
 0x175   : > { %v4718_v1 = vmul.f32 %v628_v16, %v4618_v51  ;;  %v4723_v26 = vmul.f32 %v629_v47, %v4620_v48 }
 0x176   : > { %v4622_v49 = vpop.xlane.xlu1 %479  ;;  %v4624_v55 = vpop.xlane.xlu0 %481 }
 0x177   : > { %v630_v20 = vmul.f32 0.75, %v4622_v49  ;;  %v631_v62 = vmul.f32 0.75, %v4624_v55 }
 0x179   : > { %v4726_v19 = vmul.f32 %v630_v20, %v4622_v49  ;;  %v4729_v13 = vmul.f32 %v631_v62, %v4624_v55 }
 0x17a   : > { %v4626_v58 = vpop.xlane.xlu1 %483  ;;  %v4628_v59 = vpop.xlane.xlu0 %485 }
 0x17b   : > { %v632_v24 = vmul.f32 0.75, %v4626_v58  ;;  %v633_v35 = vmul.f32 0.75, %v4628_v59 }
 0x17d   : > { %v4732_v30 = vmul.f32 %v632_v24, %v4626_v58  ;;  %v4735_v33 = vmul.f32 %v633_v35, %v4628_v59 }
 0x17e   : > { %v4630_v21 = vpop.xlane.xlu1 %487  ;;  %v4632_v63 = vpop.xlane.xlu0 %489 }
 0x17f   : > { %v634_v39 = vmul.f32 0.75, %v4630_v21  ;;  %v635_v44 = vmul.f32 0.75, %v4632_v63 }
 0x181   : > { %v4738_v51 = vmul.f32 %v634_v39, %v4630_v21  ;;  %v4743_v6 = vmul.f32 %v635_v44, %v4632_v63 }
 0x182   : > { %v4634_v36 = vpop.xlane.xlu1 %491  ;;  %v4636_v52 = vpop.xlane.xlu0 %493 }
 0x183   : > { %v636_v45 = vmul.f32 0.75, %v4634_v36  ;;  %v637_v42 = vmul.f32 0.75, %v4636_v52 }
 0x185   : > { %v4746_v49 = vmul.f32 %v636_v45, %v4634_v36  ;;  %v4749_v55 = vmul.f32 %v637_v42, %v4636_v52 }
 0x186   : > { %v4638_v53 = vpop.xlane.xlu1 %495  ;;  %v4640_v37 = vpop.xlane.xlu0 %497 }
 0x187   : > { %v638_v46 = vmul.f32 0.75, %v4638_v53  ;;  %v639_v32 = vmul.f32 0.75, %v4640_v37 }
 0x189   : > { %v4752_v58 = vmul.f32 %v638_v46, %v4638_v53  ;;  %v4755_v21 = vmul.f32 %v639_v32, %v4640_v37 }
 0x18a   : > { %v4642_v4 = vpop.xlane.xlu1 %499  ;;  %v4644_v7 = vpop.xlane.xlu0 %501 }
 0x18b   : > { %v640_v22 = vmul.f32 0.75, %v4642_v4  ;;  %v641_v3 = vmul.f32 0.75, %v4644_v7 }
 0x18d   : > { %v4758_v16 = vmul.f32 %v640_v22, %v4642_v4  ;;  %v4766_v62 = vmul.f32 %v641_v3, %v4644_v7 }
 0x18e   : > { %v4646_v9 = vpop.xlane.xlu1 %503  ;;  %v4648_v11 = vpop.xlane.xlu0 %505 }
 0x18f   : > { %v642_v48 = vmul.f32 0.75, %v4646_v9  ;;  %v643_v63 = vmul.f32 0.75, %v4648_v11 }
 0x191   : > { %v4769_v37 = vmul.f32 %v642_v48, %v4646_v9  ;;  %v4774_v32 = vmul.f32 %v643_v63, %v4648_v11 }
 0x192   : > { %v4650_v56 = vpop.xlane.xlu1 %507  ;;  %v4652_v57 = vpop.xlane.xlu0 %509 }
 0x193   : > { %v644_v36 = vmul.f32 0.75, %v4650_v56  ;;  %v645_v20 = vmul.f32 0.75, %v4652_v57 }
 0x195   : > { %v4777_v3 = vmul.f32 %v644_v36, %v4650_v56  ;;  %v4780_v9 = vmul.f32 %v645_v20, %v4652_v57 }
 0x196   : > { %v4657_v60 = vpop.xlane.xlu1 %511  ;;  %v4659_v61 = vpop.xlane.xlu0 %513 }
 0x197   : > { %v646_v52 = vmul.f32 0.75, %v4657_v60  ;;  %v647_v53 = vmul.f32 0.75, %v4659_v61 }
 0x199   : > { %v4786_v48 = vmul.f32 %v647_v53, %v4659_v61 }
 0x19a   : > { %v4684_v2 = vpop.xlane.xlu1 %515  ;;  %v4686_v5 = vpop.xlane.xlu0 %517 }
 0x19b   : > { %v648_v4 = vmul.f32 0.75, %v4684_v2  ;;  %v649_v35 = vmul.f32 0.75, %v4686_v5 }
 0x19d   : > { %v4794_v56 = vmul.f32 %v649_v35, %v4686_v5 }
 0x19e   : > { %v520_v17 = vpop.xlane.xlu1 %519  ;;  %v522_v15 = vpop.xlane.xlu0 %521 }
 0x19f   : > { %v650_v39 = vmul.f32 0.75, %v520_v17  ;;  %v651_v44 = vmul.f32 0.75, %v522_v15 }
 0x1a1   : > { %v4796_v36 = vmul.f32 %v650_v39, %v520_v17  ;;  %v4798_v57 = vmul.f32 %v651_v44, %v522_v15 }
 0x1a2   : > { %v524_v59 = vpop.xlane.xlu1 %523  ;;  %v558_v27 = vpop.xlane.xlu0 %557 }
 0x1a3   : > { %v685_v47 = vmul.f32 0.25, %v558_v27  ;;  %v652_v45 = vmul.f32 0.75, %v524_v59 }
 0x1a5   : > { %v717_v24 = vadd.f32 %v685_v47, %v653_v0  ;;  %v4783_v0 = vmul.f32 %v646_v52, %v4657_v60  ;;  %v4789_v47 = vmul.f32 %v648_v4, %v4684_v2  ;;  %v4800_v60 = vmul.f32 %v652_v45, %v524_v59 }
 0x1a6   : > { %v560_v42 = vpop.xlane.xlu1 %559  ;;  %v562_v46 = vpop.xlane.xlu0 %561 }
 0x1a7   : > { %v749_v22 = vmul.f32 0.5, %v717_v24  ;;  %v686_v27 = vmul.f32 0.25, %v560_v42  ;;  %v687_v7 = vmul.f32 0.25, %v562_v46  ;;  %5758 = vst [vmem:[#allocation9_spill] sm:$0xff] %v4800_v60 }
 0x1a9   : > { %v781_v11 = vsub.f32 1.0, %v749_v22  ;;  %v718_v63 = vadd.f32 %v686_v27, %v4682_v43  ;;  %v719_v24 = vadd.f32 %v687_v7, %v4694_v12 }
 0x1aa   : > { %v564_v20 = vpop.xlane.xlu1 %563  ;;  %v566_v61 = vpop.xlane.xlu0 %565 }
 0x1ab   : > { %v750_v52 = vmul.f32 0.5, %v718_v63  ;;  %v751_v53 = vmul.f32 0.5, %v719_v24  ;;  %v688_v2 = vmul.f32 0.25, %v564_v20  ;;  %v689_v4 = vmul.f32 0.25, %v566_v61 }
 0x1ac   : > { %v848_v42 = vrot.slane %v781_v11, %v4662_v34  ;;  %v852_v43 = vrot.slane %v781_v11, %v4665_v31  ;;  %v856_v12 = vrot.slane %v781_v11, %v4668_v38  ;;  %v860_v5 = vrot.slane %v781_v11, %v4671_v50 }
 0x1ad   : > { %v4806_v17 = vsub.f32 1.0, %v750_v52  ;;  %v4808_v15 = vsub.f32 1.0, %v751_v53  ;;  %v720_v59 = vadd.f32 %v688_v2, %v4696_v29  ;;  %v721_v35 = vadd.f32 %v689_v4, %v4704_v14 }
 0x1ae   : > { %v568_v39 = vpop.xlane.xlu1 %567  ;;  %v570_v44 = vpop.xlane.xlu0 %569  ;;  %v864_v45 = vrot.slane %v781_v11, %v4674_v54  ;;  %v868_v46 = vrot.slane %v781_v11, %v4677_v18  ;;  %v872_v22 = vrot.slane %v781_v11, %v4680_v23  ;;  %v876_v27 = vrot.slane %v781_v11, %v4689_v8 }
 0x1af   : > { %v752_v7 = vmul.f32 0.5, %v720_v59  ;;  %v753_v63 = vmul.f32 0.5, %v721_v35  ;;  %v690_v24 = vmul.f32 0.25, %v568_v39  ;;  %v691_v20 = vmul.f32 0.25, %v570_v44 }
 0x1b0   : > { %v1869_v61 = vcombine.low %v848_v42, %v852_v43  ;;  %v1870_v52 = vcombine.low %v856_v12, %v860_v5  ;;  %v1871_v53 = vcombine.low %v864_v45, %v868_v46  ;;  %v1872_v29 = vcombine.low %v872_v22, %v876_v27 }
 0x1b1   : > { %v4816_v2 = vsub.f32 1.0, %v752_v7  ;;  %v4818_v14 = vsub.f32 1.0, %v753_v63  ;;  %v722_v4 = vadd.f32 %v690_v24, %v4706_v28  ;;  %v723_v25 = vadd.f32 %v691_v20, %v4715_v40 }
 0x1b2   : > { %v572_v41 = vpop.xlane.xlu1 %571  ;;  %v574_v60 = vpop.xlane.xlu0 %573  ;;  %v1879_v11 = vrot.slane %v1869_v61, %v4692_v10  ;;  %v1886_v59 = vrot.slane %v1870_v52, %v4692_v10  ;;  %v1893_v35 = vrot.slane %v1871_v53, %v4692_v10  ;;  %v1900_v42 = vrot.slane %v1872_v29, %v4692_v10 }
 0x1b3   : > { %v754_v43 = vmul.f32 0.5, %v722_v4  ;;  %v755_v12 = vmul.f32 0.5, %v723_v25  ;;  %v692_v5 = vmul.f32 0.25, %v572_v41  ;;  %v693_v39 = vmul.f32 0.25, %v574_v60 }
 0x1b4   : > { %v1901_v44 = vcombine.low %v1879_v11, %v1886_v59  ;;  %v1902_v45 = vcombine.low %v1893_v35, %v1900_v42  ;;  %v880_v28 = vrot.slane %v4806_v17, %v4662_v34  ;;  %v884_v40 = vrot.slane %v4806_v17, %v4665_v31 }
 0x1b5   : > { %v4830_v46 = vsub.f32 1.0, %v754_v43  ;;  %v4832_v22 = vsub.f32 1.0, %v755_v12  ;;  %v724_v27 = vadd.f32 %v692_v5, %v4718_v1  ;;  %v725_v7 = vadd.f32 %v693_v39, %v4723_v26 }
 0x1b6   : > { %v576_v63 = vpop.xlane.xlu1 %575  ;;  %v578_v25 = vpop.xlane.xlu0 %577  ;;  %v1909_v41 = vrot.slane %v1901_v44, %v4692_v10  ;;  %v1916_v60 = vrot.slane %v1902_v45, %v4692_v10  ;;  %v888_v24 = vrot.slane %v4806_v17, %v4668_v38  ;;  %v892_v20 = vrot.slane %v4806_v17, %v4671_v50 }
 0x1b7   : > { %v756_v61 = vmul.f32 0.5, %v724_v27  ;;  %v757_v52 = vmul.f32 0.5, %v725_v7  ;;  %v694_v53 = vmul.f32 0.25, %v576_v63  ;;  %v695_v29 = vmul.f32 0.25, %v578_v25 }
 0x1b8   : > { %v1917_v4 = vcombine.low %v1909_v41, %v1916_v60  ;;  %v896_v1 = vrot.slane %v4806_v17, %v4674_v54  ;;  %v900_v26 = vrot.slane %v4806_v17, %v4677_v18  ;;  %v904_v11 = vrot.slane %v4806_v17, %v4680_v23 }
 0x1b9   : > { %v4848_v59 = vsub.f32 1.0, %v756_v61  ;;  %v4850_v35 = vsub.f32 1.0, %v757_v52  ;;  %v726_v42 = vadd.f32 %v694_v53, %v4726_v19  ;;  %v727_v43 = vadd.f32 %v695_v29, %v4729_v13 }
 0x1ba   : > { %3438 = vperm.xlu0 %3897, %v1917_v4   ;;  %v580_v12 = vpop.xlane.xlu1 %579  ;;  %v582_v5 = vpop.xlane.xlu0 %581  ;;  %v908_v39 = vrot.slane %v4806_v17, %v4689_v8  ;;  %v1918_v44 = vcombine.low %v880_v28, %v884_v40  ;;  %v1919_v45 = vcombine.low %v888_v24, %v892_v20  ;;  %v1920_v27 = vcombine.low %v896_v1, %v900_v26 }
 0x1bb   : > { %v758_v7 = vmul.f32 0.5, %v726_v42  ;;  %v759_v63 = vmul.f32 0.5, %v727_v43  ;;  %v696_v25 = vmul.f32 0.25, %v580_v12  ;;  %v697_v41 = vmul.f32 0.25, %v582_v5 }
 0x1bc   : > { %v1921_v60 = vcombine.low %v904_v11, %v908_v39  ;;  %v1928_v61 = vrot.slane %v1918_v44, %v4692_v10  ;;  %v1935_v19 = vrot.slane %v1919_v45, %v4692_v10  ;;  %v1942_v13 = vrot.slane %v1920_v27, %v4692_v10 }
 0x1bd   : > { %v4859_v52 = vsub.f32 1.0, %v758_v7  ;;  %v4861_v53 = vsub.f32 1.0, %v759_v63  ;;  %v728_v17 = vadd.f32 %v696_v25, %v4732_v30  ;;  %v729_v28 = vadd.f32 %v697_v41, %v4735_v33 }
 0x1be   : > { %v1949_v40 = vrot.slane %v1921_v60, %v4692_v10  ;;  %v1950_v24 = vcombine.low %v1928_v61, %v1935_v19  ;;  %v584_v20 = vpop.xlane.xlu1 %583  ;;  %v586_v29 = vpop.xlane.xlu0 %585  ;;  %v912_v4 = vrot.slane %v4808_v15, %v4662_v34  ;;  %v916_v1 = vrot.slane %v4808_v15, %v4665_v31 }
 0x1bf   : > { %v760_v26 = vmul.f32 0.5, %v728_v17  ;;  %v761_v11 = vmul.f32 0.5, %v729_v28  ;;  %v698_v42 = vmul.f32 0.25, %v584_v20  ;;  %v699_v43 = vmul.f32 0.25, %v586_v29 }
 0x1c0   : > { %v1951_v12 = vcombine.low %v1942_v13, %v1949_v40  ;;  %v1958_v30 = vrot.slane %v1950_v24, %v4692_v10  ;;  %v920_v33 = vrot.slane %v4808_v15, %v4668_v38  ;;  %v924_v5 = vrot.slane %v4808_v15, %v4671_v50 }
 0x1c1   : > { %v4875_v39 = vsub.f32 1.0, %v760_v26  ;;  %v4877_v44 = vsub.f32 1.0, %v761_v11  ;;  %v730_v45 = vadd.f32 %v698_v42, %v4738_v51  ;;  %v731_v27 = vadd.f32 %v699_v43, %v4743_v6 }
 0x1c2   : > { %v1965_v7 = vrot.slane %v1951_v12, %v4692_v10  ;;  %v928_v63 = vrot.slane %v4808_v15, %v4674_v54  ;;  %v932_v25 = vrot.slane %v4808_v15, %v4677_v18  ;;  %v936_v41 = vrot.slane %v4808_v15, %v4680_v23  ;;  %v588_v60 = vpop.xlane.xlu1 %587  ;;  %v590_v17 = vpop.xlane.xlu0 %589 }
 0x1c3   : > { %v762_v61 = vmul.f32 0.5, %v730_v45  ;;  %v763_v19 = vmul.f32 0.5, %v731_v27  ;;  %v940_v13 = vrot.slane %v4808_v15, %v4689_v8  ;;  %v1967_v51 = vcombine.low %v912_v4, %v916_v1 }
 0x1c4   : > { %v1966_v6 = vcombine.low %v1958_v30, %v1965_v7  ;;  %v1968_v28 = vcombine.low %v920_v33, %v924_v5  ;;  %v1969_v40 = vcombine.low %v928_v63, %v932_v25  ;;  %v700_v24 = vmul.f32 0.25, %v588_v60 }
 0x1c5   : > { %v4890_v20 = vsub.f32 1.0, %v762_v61  ;;  %v4892_v29 = vsub.f32 1.0, %v763_v19  ;;  %v1970_v26 = vcombine.low %v936_v41, %v940_v13  ;;  %v1977_v11 = vrot.slane %v1967_v51, %v4692_v10 }
 0x1c6   : > { %3441 = vperm.xlu1 %3898, %v1966_v6   ;;  %v1984_v42 = vrot.slane %v1968_v28, %v4692_v10  ;;  %v1991_v43 = vrot.slane %v1969_v40, %v4692_v10  ;;  %v732_v15 = vadd.f32 %v700_v24, %v4746_v49  ;;  %v701_v4 = vmul.f32 0.25, %v590_v17  ;;  %v592_v60 = vpop.xlane.xlu1 %591  ;;  %v594_v61 = vpop.xlane.xlu0 %593 }
 0x1c7   : > { %v1998_v1 = vrot.slane %v1970_v26, %v4692_v10  ;;  %v944_v12 = vrot.slane %v4816_v2, %v4662_v34  ;;  %v948_v30 = vrot.slane %v4816_v2, %v4665_v31  ;;  %v952_v33 = vrot.slane %v4816_v2, %v4668_v38 }
 0x1c8   : > { %v1999_v5 = vcombine.low %v1977_v11, %v1984_v42  ;;  %v764_v45 = vmul.f32 0.5, %v732_v15  ;;  %v733_v27 = vadd.f32 %v701_v4, %v4749_v55  ;;  %v956_v7 = vrot.slane %v4816_v2, %v4671_v50 }
 0x1c9   : > { %v2000_v49 = vcombine.low %v1991_v43, %v1998_v1  ;;  %v960_v63 = vrot.slane %v4816_v2, %v4674_v54  ;;  %v964_v25 = vrot.slane %v4816_v2, %v4677_v18  ;;  %v968_v41 = vrot.slane %v4816_v2, %v4680_v23 }
 0x1ca   : > { %v2007_v19 = vrot.slane %v1999_v5, %v4692_v10  ;;  %v4915_v13 = vsub.f32 1.0, %v764_v45  ;;  %v765_v55 = vmul.f32 0.5, %v733_v27  ;;  %v972_v51 = vrot.slane %v4816_v2, %v4689_v8 }
 0x1cb   : > { %v2014_v17 = vrot.slane %v2000_v49, %v4692_v10  ;;  %v2016_v6 = vcombine.low %v944_v12, %v948_v30  ;;  %v2017_v28 = vcombine.low %v952_v33, %v956_v7  ;;  %v2018_v40 = vcombine.low %v960_v63, %v964_v25 }
 0x1cc   : > { %v4920_v24 = vsub.f32 1.0, %v765_v55  ;;  %v2019_v26 = vcombine.low %v968_v41, %v972_v51  ;;  %v702_v11 = vmul.f32 0.25, %v592_v60  ;;  %v703_v42 = vmul.f32 0.25, %v594_v61  ;;  %v598_v55 = vpop.xlane.xlu0 %597 }
 0x1cd   : > { %v2015_v43 = vcombine.low %v2007_v19, %v2014_v17  ;;  %v2026_v15 = vrot.slane %v2016_v6, %v4692_v10  ;;  %v2033_v4 = vrot.slane %v2017_v28, %v4692_v10  ;;  %v2040_v1 = vrot.slane %v2018_v40, %v4692_v10 }
 0x1ce   : > { %v2047_v5 = vrot.slane %v2019_v26, %v4692_v10  ;;  %v734_v2 = vadd.f32 %v702_v11, %v4752_v58  ;;  %v735_v12 = vadd.f32 %v703_v42, %v4755_v21  ;;  %v976_v30 = vrot.slane %v4818_v14, %v4662_v34  ;;  %v596_v21 = vpop.xlane.xlu1 %595 }
 0x1cf   : > { %3444 = vperm.xlu1 %3898, %v2015_v43   ;;  %v2048_v33 = vcombine.low %v2026_v15, %v2033_v4  ;;  %v980_v45 = vrot.slane %v4818_v14, %v4665_v31  ;;  %v984_v27 = vrot.slane %v4818_v14, %v4668_v38  ;;  %v988_v7 = vrot.slane %v4818_v14, %v4671_v50 }
 0x1d0   : > { %v2049_v49 = vcombine.low %v2040_v1, %v2047_v5  ;;  %v766_v63 = vmul.f32 0.5, %v734_v2  ;;  %v767_v25 = vmul.f32 0.5, %v735_v12  ;;  %v992_v58 = vrot.slane %v4818_v14, %v4674_v54 }
 0x1d1   : > { %v2056_v41 = vrot.slane %v2048_v33, %v4692_v10  ;;  %v996_v60 = vrot.slane %v4818_v14, %v4677_v18  ;;  %v1000_v61 = vrot.slane %v4818_v14, %v4680_v23  ;;  %v1004_v19 = vrot.slane %v4818_v14, %v4689_v8 }
 0x1d2   : > { %v2063_v51 = vrot.slane %v2049_v49, %v4692_v10  ;;  %v4946_v17 = vsub.f32 1.0, %v766_v63  ;;  %v4948_v6 = vsub.f32 1.0, %v767_v25  ;;  %v2065_v28 = vcombine.low %v976_v30, %v980_v45 }
 0x1d3   : > { %v2066_v40 = vcombine.low %v984_v27, %v988_v7  ;;  %v2067_v26 = vcombine.low %v992_v58, %v996_v60  ;;  %v2068_v11 = vcombine.low %v1000_v61, %v1004_v19  ;;  %v704_v42 = vmul.f32 0.25, %v596_v21 }
 0x1d4   : > { %v2064_v43 = vcombine.low %v2056_v41, %v2063_v51  ;;  %v2075_v15 = vrot.slane %v2065_v28, %v4692_v10  ;;  %v705_v4 = vmul.f32 0.25, %v598_v55  ;;  %v1136_v1 = vrot.slane %v4859_v52, %v4662_v34 }
 0x1d5   : > { %v2082_v14 = vrot.slane %v2066_v40, %v4692_v10  ;;  %v2089_v5 = vrot.slane %v2067_v26, %v4692_v10  ;;  %v2096_v2 = vrot.slane %v2068_v11, %v4692_v10  ;;  %v736_v12 = vadd.f32 %v704_v42, %v4758_v16 }
 0x1d6   : > { %3447 = vperm.xlu1 %3898, %v2064_v43   ;;  %v737_v30 = vadd.f32 %v705_v4, %v4766_v62  ;;  %v1140_v33 = vrot.slane %v4859_v52, %v4665_v31  ;;  %v1144_v45 = vrot.slane %v4859_v52, %v4668_v38  ;;  %v1148_v27 = vrot.slane %v4859_v52, %v4671_v50 }
 0x1d7   : > { %v2097_v7 = vcombine.low %v2075_v15, %v2082_v14  ;;  %v2098_v49 = vcombine.low %v2089_v5, %v2096_v2  ;;  %v768_v63 = vmul.f32 0.5, %v736_v12  ;;  %v1152_v25 = vrot.slane %v4859_v52, %v4674_v54  ;;  %v600_v14 = vpop.xlane.xlu1 %599  ;;  %v602_v5 = vpop.xlane.xlu0 %601 }
 0x1d8   : > { %v769_v58 = vmul.f32 0.5, %v737_v30  ;;  %v1156_v16 = vrot.slane %v4859_v52, %v4677_v18  ;;  %v1160_v62 = vrot.slane %v4859_v52, %v4680_v23  ;;  %v1164_v21 = vrot.slane %v4859_v52, %v4689_v8 }
 0x1d9   : > { %v2105_v41 = vrot.slane %v2097_v7, %v4692_v10  ;;  %v2112_v60 = vrot.slane %v2098_v49, %v4692_v10  ;;  %v4974_v61 = vsub.f32 1.0, %v768_v63  ;;  %v2310_v19 = vcombine.low %v1136_v1, %v1140_v33 }
 0x1da   : > { %v4976_v55 = vsub.f32 1.0, %v769_v58  ;;  %v2311_v51 = vcombine.low %v1144_v45, %v1148_v27  ;;  %v2312_v28 = vcombine.low %v1152_v25, %v1156_v16  ;;  %v2313_v40 = vcombine.low %v1160_v62, %v1164_v21 }
 0x1db   : > { %v2113_v26 = vcombine.low %v2105_v41, %v2112_v60  ;;  %v2320_v11 = vrot.slane %v2310_v19, %v4692_v10  ;;  %v1008_v42 = vrot.slane %v4830_v46, %v4662_v34  ;;  %v1012_v52 = vrot.slane %v4830_v46, %v4665_v31 }
 0x1dc   : > { %v2327_v43 = vrot.slane %v2311_v51, %v4692_v10  ;;  %v2334_v15 = vrot.slane %v2312_v28, %v4692_v10  ;;  %v2341_v4 = vrot.slane %v2313_v40, %v4692_v10  ;;  %v1016_v1 = vrot.slane %v4830_v46, %v4668_v38 }
 0x1dd   : > { %3450 = vperm.xlu1 %3898, %v2113_v26   ;;  %v1020_v2 = vrot.slane %v4830_v46, %v4671_v50  ;;  %v1024_v12 = vrot.slane %v4830_v46, %v4674_v54  ;;  %v1028_v30 = vrot.slane %v4830_v46, %v4677_v18  ;;  %v1032_v33 = vrot.slane %v4830_v46, %v4680_v23 }
 0x1de   : > { %v2342_v45 = vcombine.low %v2320_v11, %v2327_v43  ;;  %v2343_v27 = vcombine.low %v2334_v15, %v2341_v4  ;;  %v1036_v7 = vrot.slane %v4830_v46, %v4689_v8  ;;  %v2114_v49 = vcombine.low %v1008_v42, %v1012_v52 }
 0x1df   : > { %v2115_v63 = vcombine.low %v1016_v1, %v1020_v2  ;;  %v2116_v25 = vcombine.low %v1024_v12, %v1028_v30  ;;  %v706_v58 = vmul.f32 0.25, %v600_v14  ;;  %v707_v16 = vmul.f32 0.25, %v602_v5  ;;  %v604_v5 = vpop.xlane.xlu1 %603  ;;  %v606_v2 = vpop.xlane.xlu0 %605 }
 0x1e0   : > { %v2350_v62 = vrot.slane %v2342_v45, %v4692_v10  ;;  %v2357_v21 = vrot.slane %v2343_v27, %v4692_v10  ;;  %v2117_v41 = vcombine.low %v1032_v33, %v1036_v7  ;;  %v2124_v60 = vrot.slane %v2114_v49, %v4692_v10 }
 0x1e1   : > { %v2131_v19 = vrot.slane %v2115_v63, %v4692_v10  ;;  %v2138_v51 = vrot.slane %v2116_v25, %v4692_v10  ;;  %v738_v28 = vadd.f32 %v706_v58, %v4769_v37  ;;  %v739_v46 = vadd.f32 %v707_v16, %v4774_v32 }
 0x1e2   : > { %v2358_v40 = vcombine.low %v2350_v62, %v2357_v21  ;;  %v2145_v26 = vrot.slane %v2117_v41, %v4692_v10  ;;  %v1040_v11 = vrot.slane %v4832_v22, %v4662_v34  ;;  %v1044_v42 = vrot.slane %v4832_v22, %v4665_v31 }
 0x1e3   : > { %v2146_v52 = vcombine.low %v2124_v60, %v2131_v19  ;;  %v770_v43 = vmul.f32 0.5, %v738_v28  ;;  %v771_v15 = vmul.f32 0.5, %v739_v46  ;;  %v1048_v4 = vrot.slane %v4832_v22, %v4668_v38 }
 0x1e4   : > { %3465 = vperm.xlu0 %3897, %v2358_v40   ;;  %v2147_v1 = vcombine.low %v2138_v51, %v2145_v26  ;;  %v1052_v37 = vrot.slane %v4832_v22, %v4671_v50  ;;  %v1056_v32 = vrot.slane %v4832_v22, %v4674_v54  ;;  %v1060_v14 = vrot.slane %v4832_v22, %v4677_v18 }
 0x1e5   : > { %v2154_v12 = vrot.slane %v2146_v52, %v4692_v10  ;;  %v5019_v30 = vsub.f32 1.0, %v770_v43  ;;  %v5021_v33 = vsub.f32 1.0, %v771_v15  ;;  %v1064_v45 = vrot.slane %v4832_v22, %v4680_v23  ;;  %v608_v15 = vpop.xlane.xlu1 %607 }
 0x1e6   : > { %v2161_v27 = vrot.slane %v2147_v1, %v4692_v10  ;;  %v1068_v7 = vrot.slane %v4832_v22, %v4689_v8  ;;  %v2163_v49 = vcombine.low %v1040_v11, %v1044_v42  ;;  %v2164_v63 = vcombine.low %v1048_v4, %v1052_v37 }
 0x1e7   : > { %v2165_v25 = vcombine.low %v1056_v32, %v1060_v14  ;;  %v708_v58 = vmul.f32 0.25, %v604_v5  ;;  %v709_v16 = vmul.f32 0.25, %v606_v2  ;;  %v1072_v62 = vrot.slane %v4848_v59, %v4662_v34  ;;  %v610_v14 = vpop.xlane.xlu0 %609 }
 0x1e8   : > { %v2162_v21 = vcombine.low %v2154_v12, %v2161_v27  ;;  %v2166_v41 = vcombine.low %v1064_v45, %v1068_v7  ;;  %v2173_v60 = vrot.slane %v2163_v49, %v4692_v10  ;;  %v2180_v19 = vrot.slane %v2164_v63, %v4692_v10 }
 0x1e9   : > { %v2187_v51 = vrot.slane %v2165_v25, %v4692_v10  ;;  %v740_v28 = vadd.f32 %v708_v58, %v4777_v3  ;;  %v741_v22 = vadd.f32 %v709_v16, %v4780_v9  ;;  %v1076_v46 = vrot.slane %v4848_v59, %v4665_v31 }
 0x1ea   : > { %3453 = vperm.xlu1 %3898, %v2162_v21   ;;  %v2194_v40 = vrot.slane %v2166_v41, %v4692_v10  ;;  %v2195_v26 = vcombine.low %v2173_v60, %v2180_v19  ;;  %v1080_v11 = vrot.slane %v4848_v59, %v4668_v38  ;;  %v1084_v42 = vrot.slane %v4848_v59, %v4671_v50 }
 0x1eb   : > { %v772_v52 = vmul.f32 0.5, %v740_v28  ;;  %v773_v43 = vmul.f32 0.5, %v741_v22  ;;  %v1088_v3 = vrot.slane %v4848_v59, %v4674_v54  ;;  %v1092_v9 = vrot.slane %v4848_v59, %v4677_v18 }
 0x1ec   : > { %v2196_v4 = vcombine.low %v2187_v51, %v2194_v40  ;;  %v2203_v1 = vrot.slane %v2195_v26, %v4692_v10  ;;  %v1096_v37 = vrot.slane %v4848_v59, %v4680_v23  ;;  %v1100_v32 = vrot.slane %v4848_v59, %v4689_v8 }
 0x1ed   : > { %v5051_v5 = vsub.f32 1.0, %v772_v52  ;;  %v5053_v2 = vsub.f32 1.0, %v773_v43  ;;  %v2212_v12 = vcombine.low %v1072_v62, %v1076_v46  ;;  %v2213_v45 = vcombine.low %v1080_v11, %v1084_v42 }
 0x1ee   : > { %v2210_v27 = vrot.slane %v2196_v4, %v4692_v10  ;;  %v2214_v7 = vcombine.low %v1088_v3, %v1092_v9  ;;  %v2215_v49 = vcombine.low %v1096_v37, %v1100_v32  ;;  %v710_v63 = vmul.f32 0.25, %v608_v15 }
 0x1ef   : > { %v2222_v25 = vrot.slane %v2212_v12, %v4692_v10  ;;  %v2229_v58 = vrot.slane %v2213_v45, %v4692_v10  ;;  %v711_v16 = vmul.f32 0.25, %v610_v14  ;;  %v1104_v59 = vrot.slane %v4850_v35, %v4662_v34 }
 0x1f0   : > { %v2211_v21 = vcombine.low %v2203_v1, %v2210_v27  ;;  %v2236_v41 = vrot.slane %v2214_v7, %v4692_v10  ;;  %v2243_v60 = vrot.slane %v2215_v49, %v4692_v10  ;;  %v742_v62 = vadd.f32 %v710_v63, %v4783_v0 }
 0x1f1   : > { %v2244_v19 = vcombine.low %v2222_v25, %v2229_v58  ;;  %v743_v51 = vadd.f32 %v711_v16, %v4786_v48  ;;  %v1108_v28 = vrot.slane %v4850_v35, %v4665_v31  ;;  %v1112_v22 = vrot.slane %v4850_v35, %v4668_v38  ;;  %v612_v25 = vpop.xlane.xlu1 %611  ;;  %v614_v58 = vpop.xlane.xlu0 %613 }
 0x1f2   : > { %3456 = vperm.xlu1 %3898, %v2211_v21   ;;  %v2245_v46 = vcombine.low %v2236_v41, %v2243_v60  ;;  %v774_v40 = vmul.f32 0.5, %v742_v62  ;;  %v1116_v26 = vrot.slane %v4850_v35, %v4671_v50  ;;  %v1120_v11 = vrot.slane %v4850_v35, %v4674_v54 }
 0x1f3   : > { %v2252_v0 = vrot.slane %v2244_v19, %v4692_v10  ;;  %v775_v42 = vmul.f32 0.5, %v743_v51  ;;  %v1124_v48 = vrot.slane %v4850_v35, %v4677_v18  ;;  %v1128_v52 = vrot.slane %v4850_v35, %v4680_v23 }
 0x1f4   : > { %v2259_v43 = vrot.slane %v2245_v46, %v4692_v10  ;;  %v5078_v3 = vsub.f32 1.0, %v774_v40  ;;  %v1132_v9 = vrot.slane %v4850_v35, %v4689_v8  ;;  %v2261_v15 = vcombine.low %v1104_v59, %v1108_v28 }
 0x1f5   : > { %v5082_v4 = vsub.f32 1.0, %v775_v42  ;;  %v2262_v1 = vcombine.low %v1112_v22, %v1116_v26  ;;  %v2263_v37 = vcombine.low %v1120_v11, %v1124_v48  ;;  %v1360_v32 = vrot.slane %v4920_v24, %v4662_v34 }
 0x1f6   : > { %v2260_v14 = vcombine.low %v2252_v0, %v2259_v43  ;;  %v2264_v12 = vcombine.low %v1128_v52, %v1132_v9  ;;  %v2271_v45 = vrot.slane %v2261_v15, %v4692_v10  ;;  %v1364_v27 = vrot.slane %v4920_v24, %v4665_v31 }
 0x1f7   : > { %v2278_v7 = vrot.slane %v2262_v1, %v4692_v10  ;;  %v2285_v49 = vrot.slane %v2263_v37, %v4692_v10  ;;  %v1368_v35 = vrot.slane %v4920_v24, %v4668_v38  ;;  %v1372_v63 = vrot.slane %v4920_v24, %v4671_v50 }
 0x1f8   : > { %3459 = vperm.xlu1 %3898, %v2260_v14   ;;  %v2292_v16 = vrot.slane %v2264_v12, %v4692_v10  ;;  %v1376_v59 = vrot.slane %v4920_v24, %v4674_v54  ;;  %v1380_v21 = vrot.slane %v4920_v24, %v4677_v18  ;;  %v1384_v41 = vrot.slane %v4920_v24, %v4680_v23 }
 0x1f9   : > { %v2293_v60 = vcombine.low %v2271_v45, %v2278_v7  ;;  %v1388_v62 = vrot.slane %v4920_v24, %v4689_v8  ;;  %v2653_v19 = vcombine.low %v1360_v32, %v1364_v27  ;;  %v2654_v51 = vcombine.low %v1368_v35, %v1372_v63 }
 0x1fa   : > { %v2294_v28 = vcombine.low %v2285_v49, %v2292_v16  ;;  %v2655_v22 = vcombine.low %v1376_v59, %v1380_v21  ;;  %v712_v46 = vmul.f32 0.25, %v612_v25  ;;  %v713_v40 = vmul.f32 0.25, %v614_v58 }
 0x1fb   : > { %v2301_v26 = vrot.slane %v2293_v60, %v4692_v10  ;;  %v2656_v11 = vcombine.low %v1384_v41, %v1388_v62  ;;  %v2663_v0 = vrot.slane %v2653_v19, %v4692_v10  ;;  %v2670_v42 = vrot.slane %v2654_v51, %v4692_v10 }
 0x1fc   : > { %v2308_v48 = vrot.slane %v2294_v28, %v4692_v10  ;;  %v2677_v52 = vrot.slane %v2655_v22, %v4692_v10  ;;  %v744_v43 = vadd.f32 %v712_v46, %v4789_v47  ;;  %v745_v24 = vadd.f32 %v713_v40, %v4794_v56  ;;  %v616_v40 = vpop.xlane.xlu1 %615 }
 0x1fd   : > { %v2684_v9 = vrot.slane %v2656_v11, %v4692_v10  ;;  %v2685_v15 = vcombine.low %v2663_v0, %v2670_v42  ;;  %v1168_v1 = vrot.slane %v4861_v53, %v4662_v34  ;;  %v1172_v37 = vrot.slane %v4861_v53, %v4665_v31  ;;  %v618_v42 = vpop.xlane.xlu0 %617 }
 0x1fe   : > { %v2309_v32 = vcombine.low %v2301_v26, %v2308_v48  ;;  %v776_v14 = vmul.f32 0.5, %v744_v43  ;;  %v777_v12 = vmul.f32 0.5, %v745_v24  ;;  %v1176_v45 = vrot.slane %v4861_v53, %v4668_v38 }
 0x1ff   : > { %v2686_v27 = vcombine.low %v2677_v52, %v2684_v9  ;;  %v2693_v47 = vrot.slane %v2685_v15, %v4692_v10  ;;  %v1180_v56 = vrot.slane %v4861_v53, %v4671_v50  ;;  %v1184_v7 = vrot.slane %v4861_v53, %v4674_v54 }
 0x200   : > { %3462 = vperm.xlu1 %3898, %v2309_v32   ;;  %v5123_v49 = vsub.f32 1.0, %v776_v14  ;;  %v5125_v35 = vsub.f32 1.0, %v777_v12  ;;  %v1188_v63 = vrot.slane %v4861_v53, %v4677_v18  ;;  %v1192_v25 = vrot.slane %v4861_v53, %v4680_v23 }
 0x201   : > { %v2700_v58 = vrot.slane %v2686_v27, %v4692_v10  ;;  %v1196_v16 = vrot.slane %v4861_v53, %v4689_v8  ;;  %v2359_v59 = vcombine.low %v1168_v1, %v1172_v37  ;;  %v2360_v21 = vcombine.low %v1176_v45, %v1180_v56 }
 0x202   : > { %v2361_v41 = vcombine.low %v1184_v7, %v1188_v63  ;;  %v1424_v60 = vrot.slane %v4948_v6, %v4662_v34  ;;  %v1428_v62 = vrot.slane %v4948_v6, %v4665_v31  ;;  %v1432_v19 = vrot.slane %v4948_v6, %v4668_v38 }
 0x203   : > { %v2701_v51 = vcombine.low %v2693_v47, %v2700_v58  ;;  %v2362_v28 = vcombine.low %v1192_v25, %v1196_v16  ;;  %v2369_v22 = vrot.slane %v2359_v59, %v4692_v10  ;;  %v2376_v46 = vrot.slane %v2360_v21, %v4692_v10 }
 0x204   : > { %v2383_v53 = vrot.slane %v2361_v41, %v4692_v10  ;;  %v1436_v26 = vrot.slane %v4948_v6, %v4671_v50  ;;  %v1440_v11 = vrot.slane %v4948_v6, %v4674_v54  ;;  %v1444_v0 = vrot.slane %v4948_v6, %v4677_v18 }
 0x205   : > { %3486 = vperm.xlu0 %3897, %v2701_v51   ;;  %v2390_v48 = vrot.slane %v2362_v28, %v4692_v10  ;;  %v2391_v52 = vcombine.low %v2369_v22, %v2376_v46  ;;  %v1448_v43 = vrot.slane %v4948_v6, %v4680_v23  ;;  %v1452_v24 = vrot.slane %v4948_v6, %v4689_v8 }
 0x206   : > { %v2751_v9 = vcombine.low %v1424_v60, %v1428_v62  ;;  %v2752_v15 = vcombine.low %v1432_v19, %v1436_v26  ;;  %v2753_v1 = vcombine.low %v1440_v11, %v1444_v0  ;;  %v714_v37 = vmul.f32 0.25, %v616_v40 }
 0x207   : > { %v2392_v32 = vcombine.low %v2383_v53, %v2390_v48  ;;  %v2399_v14 = vrot.slane %v2391_v52, %v4692_v10  ;;  %v2754_v12 = vcombine.low %v1448_v43, %v1452_v24  ;;  %v715_v45 = vmul.f32 0.25, %v618_v42 }
 0x208   : > { %v2761_v27 = vrot.slane %v2751_v9, %v4692_v10  ;;  %v2768_v47 = vrot.slane %v2752_v15, %v4692_v10  ;;  %v2775_v56 = vrot.slane %v2753_v1, %v4692_v10  ;;  %v746_v7 = vadd.f32 %v714_v37, %v4796_v36 }
 0x209   : > { %v2406_v63 = vrot.slane %v2392_v32, %v4692_v10  ;;  %v2782_v6 = vrot.slane %v2754_v12, %v4692_v10  ;;  %v747_v25 = vadd.f32 %v715_v45, %v4798_v57  ;;  %v1392_v58 = vrot.slane %v4946_v17, %v4662_v34  ;;  %v620_v32 = vpop.xlane.xlu1 %619 }
 0x20a   : > { %v2783_v16 = vcombine.low %v2761_v27, %v2768_v47  ;;  %v778_v59 = vmul.f32 0.5, %v746_v7  ;;  %v1396_v21 = vrot.slane %v4946_v17, %v4665_v31  ;;  %v1400_v41 = vrot.slane %v4946_v17, %v4668_v38 }
 0x20b   : > { %v2407_v60 = vcombine.low %v2399_v14, %v2406_v63  ;;  %v2784_v62 = vcombine.low %v2775_v56, %v2782_v6  ;;  %v779_v36 = vmul.f32 0.5, %v747_v25  ;;  %v1404_v19 = vrot.slane %v4946_v17, %v4671_v50 }
 0x20c   : > { %v2791_v51 = vrot.slane %v2783_v16, %v4692_v10  ;;  %v5171_v57 = vsub.f32 1.0, %v778_v59  ;;  %v1408_v28 = vrot.slane %v4946_v17, %v4674_v54  ;;  %v1412_v22 = vrot.slane %v4946_v17, %v4677_v18 }
 0x20d   : > { %3468 = vperm.xlu1 %3898, %v2407_v60   ;;  %v2798_v46 = vrot.slane %v2784_v62, %v4692_v10  ;;  %v5178_v40 = vsub.f32 1.0, %v779_v36  ;;  %v1416_v53 = vrot.slane %v4946_v17, %v4680_v23  ;;  %v1420_v26 = vrot.slane %v4946_v17, %v4689_v8 }
 0x20e   : > { %v2702_v11 = vcombine.low %v1392_v58, %v1396_v21  ;;  %v2703_v0 = vcombine.low %v1400_v41, %v1404_v19  ;;  %v2704_v42 = vcombine.low %v1408_v28, %v1412_v22  ;;  %v1488_v48 = vrot.slane %v4976_v55, %v4662_v34 }
 0x20f   : > { %v2799_v52 = vcombine.low %v2791_v51, %v2798_v46  ;;  %v2705_v43 = vcombine.low %v1416_v53, %v1420_v26  ;;  %v1492_v24 = vrot.slane %v4976_v55, %v4665_v31  ;;  %v1496_v9 = vrot.slane %v4976_v55, %v4668_v38 }
 0x210   : > { %v2712_v15 = vrot.slane %v2702_v11, %v4692_v10  ;;  %v2719_v1 = vrot.slane %v2703_v0, %v4692_v10  ;;  %v2726_v17 = vrot.slane %v2704_v42, %v4692_v10  ;;  %v1500_v37 = vrot.slane %v4976_v55, %v4671_v50 }
 0x211   : > { %3492 = vperm.xlu0 %3897, %v2799_v52   ;;  %v2733_v14 = vrot.slane %v2705_v43, %v4692_v10  ;;  %v1504_v12 = vrot.slane %v4976_v55, %v4674_v54  ;;  %v1508_v45 = vrot.slane %v4976_v55, %v4677_v18  ;;  %v1512_v27 = vrot.slane %v4976_v55, %v4680_v23 }
 0x212   : > { %v2734_v47 = vcombine.low %v2712_v15, %v2719_v1  ;;  %v1516_v56 = vrot.slane %v4976_v55, %v4689_v8  ;;  %v2849_v7 = vcombine.low %v1488_v48, %v1492_v24  ;;  %v2850_v63 = vcombine.low %v1496_v9, %v1500_v37  ;;  %v5759_v55 = vld [vmem:[#allocation9_spill] sm:$0xff] }
 0x213   : > { %v2735_v6 = vcombine.low %v2726_v17, %v2733_v14  ;;  %v2851_v25 = vcombine.low %v1504_v12, %v1508_v45  ;;  %v716_v58 = vmul.f32 0.25, %v620_v32  ;;  %v1456_v16 = vrot.slane %v4974_v61, %v4662_v34 }
 0x214   : > { %v2742_v59 = vrot.slane %v2734_v47, %v4692_v10  ;;  %v2852_v21 = vcombine.low %v1512_v27, %v1516_v56  ;;  %v2859_v41 = vrot.slane %v2849_v7, %v4692_v10  ;;  %v2866_v60 = vrot.slane %v2850_v63, %v4692_v10 }
 0x215   : > { %v2749_v62 = vrot.slane %v2735_v6, %v4692_v10  ;;  %v2873_v36 = vrot.slane %v2851_v25, %v4692_v10  ;;  %v748_v19 = vadd.f32 %v716_v58, %v5759_v55  ;;  %v1460_v51 = vrot.slane %v4974_v61, %v4665_v31 }
 0x216   : > { %v2880_v28 = vrot.slane %v2852_v21, %v4692_v10  ;;  %v2881_v22 = vcombine.low %v2859_v41, %v2866_v60  ;;  %v1464_v46 = vrot.slane %v4974_v61, %v4668_v38  ;;  %v1468_v53 = vrot.slane %v4974_v61, %v4671_v50 }
 0x217   : > { %v2750_v26 = vcombine.low %v2742_v59, %v2749_v62  ;;  %v780_v11 = vmul.f32 0.5, %v748_v19  ;;  %v1472_v0 = vrot.slane %v4974_v61, %v4674_v54  ;;  %v1476_v42 = vrot.slane %v4974_v61, %v4677_v18 }
 0x218   : > { %v2882_v48 = vcombine.low %v2873_v36, %v2880_v28  ;;  %v2889_v52 = vrot.slane %v2881_v22, %v4692_v10  ;;  %v1480_v43 = vrot.slane %v4974_v61, %v4680_v23  ;;  %v1484_v24 = vrot.slane %v4974_v61, %v4689_v8 }
 0x219   : > { %3489 = vperm.xlu1 %3898, %v2750_v26   ;;  %v5228_v9 = vsub.f32 1.0, %v780_v11  ;;  %v2800_v15 = vcombine.low %v1456_v16, %v1460_v51  ;;  %v2801_v1 = vcombine.low %v1464_v46, %v1468_v53  ;;  %v2802_v17 = vcombine.low %v1472_v0, %v1476_v42 }
 0x21a   : > { %v2896_v37 = vrot.slane %v2882_v48, %v4692_v10  ;;  %v2803_v32 = vcombine.low %v1480_v43, %v1484_v24  ;;  %v1552_v14 = vrot.slane %v5021_v33, %v4662_v34  ;;  %v1556_v12 = vrot.slane %v5021_v33, %v4665_v31 }
 0x21b   : > { %v2810_v45 = vrot.slane %v2800_v15, %v4692_v10  ;;  %v2817_v27 = vrot.slane %v2801_v1, %v4692_v10  ;;  %v2824_v61 = vrot.slane %v2802_v17, %v4692_v10  ;;  %v1560_v47 = vrot.slane %v5021_v33, %v4668_v38 }
 0x21c   : > { %v2897_v56 = vcombine.low %v2889_v52, %v2896_v37  ;;  %v2831_v7 = vrot.slane %v2803_v32, %v4692_v10  ;;  %v1564_v63 = vrot.slane %v5021_v33, %v4671_v50  ;;  %v1568_v6 = vrot.slane %v5021_v33, %v4674_v54 }
 0x21d   : > { %v2832_v25 = vcombine.low %v2810_v45, %v2817_v27  ;;  %v1572_v58 = vrot.slane %v5021_v33, %v4677_v18  ;;  %v1576_v16 = vrot.slane %v5021_v33, %v4680_v23  ;;  %v1580_v59 = vrot.slane %v5021_v33, %v4689_v8 }
 0x21e   : > { %3498 = vperm.xlu0 %3897, %v2897_v56   ;;  %v2833_v21 = vcombine.low %v2824_v61, %v2831_v7  ;;  %v2947_v41 = vcombine.low %v1552_v14, %v1556_v12  ;;  %v2948_v60 = vcombine.low %v1560_v47, %v1564_v63  ;;  %v1520_v62 = vrot.slane %v5019_v30, %v4662_v34 }
 0x21f   : > { %v2840_v36 = vrot.slane %v2832_v25, %v4692_v10  ;;  %v2949_v55 = vcombine.low %v1568_v6, %v1572_v58  ;;  %v2950_v19 = vcombine.low %v1576_v16, %v1580_v59  ;;  %v1524_v51 = vrot.slane %v5019_v30, %v4665_v31 }
 0x220   : > { %v2847_v28 = vrot.slane %v2833_v21, %v4692_v10  ;;  %v2957_v22 = vrot.slane %v2947_v41, %v4692_v10  ;;  %v2964_v33 = vrot.slane %v2948_v60, %v4692_v10  ;;  %v1528_v46 = vrot.slane %v5019_v30, %v4668_v38 }
 0x221   : > { %v2971_v53 = vrot.slane %v2949_v55, %v4692_v10  ;;  %v2978_v26 = vrot.slane %v2950_v19, %v4692_v10  ;;  %v1532_v11 = vrot.slane %v5019_v30, %v4671_v50  ;;  %v1536_v0 = vrot.slane %v5019_v30, %v4674_v54 }
 0x222   : > { %v2848_v42 = vcombine.low %v2840_v36, %v2847_v28  ;;  %v2979_v48 = vcombine.low %v2957_v22, %v2964_v33  ;;  %v1540_v52 = vrot.slane %v5019_v30, %v4677_v18  ;;  %v1544_v43 = vrot.slane %v5019_v30, %v4680_v23 }
 0x223   : > { %v2980_v24 = vcombine.low %v2971_v53, %v2978_v26  ;;  %v1548_v15 = vrot.slane %v5019_v30, %v4689_v8  ;;  %v2898_v1 = vcombine.low %v1520_v62, %v1524_v51  ;;  %v2899_v17 = vcombine.low %v1528_v46, %v1532_v11 }
 0x224   : > { %3495 = vperm.xlu1 %3898, %v2848_v42   ;;  %v2987_v37 = vrot.slane %v2979_v48, %v4692_v10  ;;  %v2900_v32 = vcombine.low %v1536_v0, %v1540_v52  ;;  %v1616_v14 = vrot.slane %v5053_v2, %v4662_v34  ;;  %v1620_v12 = vrot.slane %v5053_v2, %v4665_v31 }
 0x225   : > { %v2994_v45 = vrot.slane %v2980_v24, %v4692_v10  ;;  %v2901_v27 = vcombine.low %v1544_v43, %v1548_v15  ;;  %v2908_v61 = vrot.slane %v2898_v1, %v4692_v10  ;;  %v2915_v47 = vrot.slane %v2899_v17, %v4692_v10 }
 0x226   : > { %v2922_v30 = vrot.slane %v2900_v32, %v4692_v10  ;;  %v1624_v56 = vrot.slane %v5053_v2, %v4668_v38  ;;  %v1628_v7 = vrot.slane %v5053_v2, %v4671_v50  ;;  %v1632_v63 = vrot.slane %v5053_v2, %v4674_v54 }
 0x227   : > { %v2995_v6 = vcombine.low %v2987_v37, %v2994_v45  ;;  %v2929_v25 = vrot.slane %v2901_v27, %v4692_v10  ;;  %v2930_v58 = vcombine.low %v2908_v61, %v2915_v47  ;;  %v1636_v16 = vrot.slane %v5053_v2, %v4677_v18 }
 0x228   : > { %v1640_v59 = vrot.slane %v5053_v2, %v4680_v23  ;;  %v1644_v21 = vrot.slane %v5053_v2, %v4689_v8  ;;  %v3045_v41 = vcombine.low %v1616_v14, %v1620_v12  ;;  %v3046_v60 = vcombine.low %v1624_v56, %v1628_v7 }
 0x229   : > { %3504 = vperm.xlu0 %3897, %v2995_v6   ;;  %v2931_v62 = vcombine.low %v2922_v30, %v2929_v25  ;;  %v2938_v36 = vrot.slane %v2930_v58, %v4692_v10  ;;  %v3047_v55 = vcombine.low %v1632_v63, %v1636_v16  ;;  %v1584_v19 = vrot.slane %v5051_v5, %v4662_v34 }
 0x22a   : > { %v3048_v51 = vcombine.low %v1640_v59, %v1644_v21  ;;  %v3055_v28 = vrot.slane %v3045_v41, %v4692_v10  ;;  %v3062_v22 = vrot.slane %v3046_v60, %v4692_v10  ;;  %v1588_v33 = vrot.slane %v5051_v5, %v4665_v31 }
 0x22b   : > { %v2945_v2 = vrot.slane %v2931_v62, %v4692_v10  ;;  %v3069_v46 = vrot.slane %v3047_v55, %v4692_v10  ;;  %v1592_v53 = vrot.slane %v5051_v5, %v4668_v38  ;;  %v1596_v26 = vrot.slane %v5051_v5, %v4671_v50 }
 0x22c   : > { %v3076_v11 = vrot.slane %v3048_v51, %v4692_v10  ;;  %v3077_v0 = vcombine.low %v3055_v28, %v3062_v22  ;;  %v1600_v42 = vrot.slane %v5051_v5, %v4674_v54  ;;  %v1604_v48 = vrot.slane %v5051_v5, %v4677_v18 }
 0x22d   : > { %v2946_v52 = vcombine.low %v2938_v36, %v2945_v2  ;;  %v1608_v43 = vrot.slane %v5051_v5, %v4680_v23  ;;  %v1612_v24 = vrot.slane %v5051_v5, %v4689_v8  ;;  %v2996_v15 = vcombine.low %v1584_v19, %v1588_v33 }
 0x22e   : > { %v3078_v1 = vcombine.low %v3069_v46, %v3076_v11  ;;  %v3085_v17 = vrot.slane %v3077_v0, %v4692_v10  ;;  %v2997_v37 = vcombine.low %v1592_v53, %v1596_v26  ;;  %v2998_v32 = vcombine.low %v1600_v42, %v1604_v48 }
 0x22f   : > { %3501 = vperm.xlu1 %3898, %v2946_v52   ;;  %v2999_v14 = vcombine.low %v1608_v43, %v1612_v24  ;;  %v3006_v12 = vrot.slane %v2996_v15, %v4692_v10  ;;  %v1680_v45 = vrot.slane %v5082_v4, %v4662_v34  ;;  %v1684_v27 = vrot.slane %v5082_v4, %v4665_v31 }
 0x230   : > { %v3092_v61 = vrot.slane %v3078_v1, %v4692_v10  ;;  %v3013_v5 = vrot.slane %v2997_v37, %v4692_v10  ;;  %v3020_v47 = vrot.slane %v2998_v32, %v4692_v10  ;;  %v1688_v30 = vrot.slane %v5082_v4, %v4668_v38 }
 0x231   : > { %v3027_v56 = vrot.slane %v2999_v14, %v4692_v10  ;;  %v1692_v7 = vrot.slane %v5082_v4, %v4671_v50  ;;  %v1696_v63 = vrot.slane %v5082_v4, %v4674_v54  ;;  %v1700_v6 = vrot.slane %v5082_v4, %v4677_v18 }
 0x232   : > { %v3093_v25 = vcombine.low %v3085_v17, %v3092_v61  ;;  %v3028_v58 = vcombine.low %v3006_v12, %v3013_v5  ;;  %v1704_v16 = vrot.slane %v5082_v4, %v4680_v23  ;;  %v1708_v59 = vrot.slane %v5082_v4, %v4689_v8 }
 0x233   : > { %v3029_v21 = vcombine.low %v3020_v47, %v3027_v56  ;;  %v3143_v41 = vcombine.low %v1680_v45, %v1684_v27  ;;  %v3144_v60 = vcombine.low %v1688_v30, %v1692_v7  ;;  %v3145_v62 = vcombine.low %v1696_v63, %v1700_v6 }
 0x234   : > { %3510 = vperm.xlu0 %3897, %v3093_v25   ;;  %v3036_v36 = vrot.slane %v3028_v58, %v4692_v10  ;;  %v3146_v55 = vcombine.low %v1704_v16, %v1708_v59  ;;  %v1648_v19 = vrot.slane %v5078_v3, %v4662_v34  ;;  %v1652_v51 = vrot.slane %v5078_v3, %v4665_v31 }
 0x235   : > { %v3043_v28 = vrot.slane %v3029_v21, %v4692_v10  ;;  %v3153_v22 = vrot.slane %v3143_v41, %v4692_v10  ;;  %v3160_v4 = vrot.slane %v3144_v60, %v4692_v10  ;;  %v3167_v33 = vrot.slane %v3145_v62, %v4692_v10 }
 0x236   : > { %v3174_v2 = vrot.slane %v3146_v55, %v4692_v10  ;;  %v1656_v46 = vrot.slane %v5078_v3, %v4668_v38  ;;  %v1660_v53 = vrot.slane %v5078_v3, %v4671_v50  ;;  %v1664_v26 = vrot.slane %v5078_v3, %v4674_v54 }
 0x237   : > { %v3044_v11 = vcombine.low %v3036_v36, %v3043_v28  ;;  %v3175_v0 = vcombine.low %v3153_v22, %v3160_v4  ;;  %v1668_v42 = vrot.slane %v5078_v3, %v4677_v18  ;;  %v1672_v48 = vrot.slane %v5078_v3, %v4680_v23 }
 0x238   : > { %v3176_v52 = vcombine.low %v3167_v33, %v3174_v2  ;;  %v1676_v43 = vrot.slane %v5078_v3, %v4689_v8  ;;  %v3094_v24 = vcombine.low %v1648_v19, %v1652_v51  ;;  %v3095_v15 = vcombine.low %v1656_v46, %v1660_v53 }
 0x239   : > { %3507 = vperm.xlu1 %3898, %v3044_v11   ;;  %v3183_v1 = vrot.slane %v3175_v0, %v4692_v10  ;;  %v3096_v17 = vcombine.low %v1664_v26, %v1668_v42  ;;  %v1712_v37 = vrot.slane %v5123_v49, %v4662_v34  ;;  %v1716_v32 = vrot.slane %v5123_v49, %v4665_v31 }
 0x23a   : > { %v3190_v14 = vrot.slane %v3176_v52, %v4692_v10  ;;  %v3097_v12 = vcombine.low %v1672_v48, %v1676_v43  ;;  %v3104_v45 = vrot.slane %v3094_v24, %v4692_v10  ;;  %v3111_v27 = vrot.slane %v3095_v15, %v4692_v10 }
 0x23b   : > { %v3118_v3 = vrot.slane %v3096_v17, %v4692_v10  ;;  %v1720_v61 = vrot.slane %v5123_v49, %v4668_v38  ;;  %v1724_v5 = vrot.slane %v5123_v49, %v4671_v50  ;;  %v1728_v47 = vrot.slane %v5123_v49, %v4674_v54 }
 0x23c   : > { %v3191_v30 = vcombine.low %v3183_v1, %v3190_v14  ;;  %v3125_v56 = vrot.slane %v3097_v12, %v4692_v10  ;;  %v3126_v7 = vcombine.low %v3104_v45, %v3111_v27  ;;  %v1732_v63 = vrot.slane %v5123_v49, %v4677_v18 }
 0x23d   : > { %v1736_v6 = vrot.slane %v5123_v49, %v4680_v23  ;;  %v1740_v25 = vrot.slane %v5123_v49, %v4689_v8  ;;  %v3192_v58 = vcombine.low %v1712_v37, %v1716_v32  ;;  %v3193_v16 = vcombine.low %v1720_v61, %v1724_v5 }
 0x23e   : > { %3516 = vperm.xlu0 %3897, %v3191_v30   ;;  %v3127_v59 = vcombine.low %v3118_v3, %v3125_v56  ;;  %v3134_v21 = vrot.slane %v3126_v7, %v4692_v10  ;;  %v3194_v41 = vcombine.low %v1728_v47, %v1732_v63  ;;  %v1200_v60 = vrot.slane %v4875_v39, %v4662_v34 }
 0x23f   : > { %v3195_v62 = vcombine.low %v1736_v6, %v1740_v25  ;;  %v3202_v36 = vrot.slane %v3192_v58, %v4692_v10  ;;  %v3209_v55 = vrot.slane %v3193_v16, %v4692_v10  ;;  %v1204_v19 = vrot.slane %v4875_v39, %v4665_v31 }
 0x240   : > { %v3141_v49 = vrot.slane %v3127_v59, %v4692_v10  ;;  %v3216_v51 = vrot.slane %v3194_v41, %v4692_v10  ;;  %v1208_v28 = vrot.slane %v4875_v39, %v4668_v38  ;;  %v1212_v22 = vrot.slane %v4875_v39, %v4671_v50 }
 0x241   : > { %v3223_v4 = vrot.slane %v3195_v62, %v4692_v10  ;;  %v3224_v33 = vcombine.low %v3202_v36, %v3209_v55  ;;  %v1216_v2 = vrot.slane %v4875_v39, %v4674_v54  ;;  %v1220_v46 = vrot.slane %v4875_v39, %v4677_v18 }
 0x242   : > { %v3142_v53 = vcombine.low %v3134_v21, %v3141_v49  ;;  %v1224_v26 = vrot.slane %v4875_v39, %v4680_v23  ;;  %v1228_v11 = vrot.slane %v4875_v39, %v4689_v8  ;;  %v2408_v0 = vcombine.low %v1200_v60, %v1204_v19 }
 0x243   : > { %v3225_v42 = vcombine.low %v3216_v51, %v3223_v4  ;;  %v3232_v48 = vrot.slane %v3224_v33, %v4692_v10  ;;  %v2409_v52 = vcombine.low %v1208_v28, %v1212_v22  ;;  %v2410_v43 = vcombine.low %v1216_v2, %v1220_v46 }
 0x244   : > { %3513 = vperm.xlu1 %3898, %v3142_v53   ;;  %v2411_v24 = vcombine.low %v1224_v26, %v1228_v11  ;;  %v2418_v15 = vrot.slane %v2408_v0, %v4692_v10  ;;  %v1744_v1 = vrot.slane %v5125_v35, %v4662_v34  ;;  %v1748_v17 = vrot.slane %v5125_v35, %v4665_v31 }
 0x245   : > { %v3239_v37 = vrot.slane %v3225_v42, %v4692_v10  ;;  %v2425_v39 = vrot.slane %v2409_v52, %v4692_v10  ;;  %v2432_v32 = vrot.slane %v2410_v43, %v4692_v10  ;;  %v1752_v14 = vrot.slane %v5125_v35, %v4668_v38 }
 0x246   : > { %v2439_v12 = vrot.slane %v2411_v24, %v4692_v10  ;;  %v1756_v45 = vrot.slane %v5125_v35, %v4671_v50  ;;  %v1760_v27 = vrot.slane %v5125_v35, %v4674_v54  ;;  %v1764_v3 = vrot.slane %v5125_v35, %v4677_v18 }
 0x247   : > { %v3240_v61 = vcombine.low %v3232_v48, %v3239_v37  ;;  %v2440_v5 = vcombine.low %v2418_v15, %v2425_v39  ;;  %v1768_v47 = vrot.slane %v5125_v35, %v4680_v23  ;;  %v1772_v30 = vrot.slane %v5125_v35, %v4689_v8 }
 0x248   : > { %v2441_v56 = vcombine.low %v2432_v32, %v2439_v12  ;;  %v3241_v7 = vcombine.low %v1744_v1, %v1748_v17  ;;  %v3242_v63 = vcombine.low %v1752_v14, %v1756_v45  ;;  %v3243_v6 = vcombine.low %v1760_v27, %v1764_v3 }
 0x249   : > { %3519 = vperm.xlu0 %3897, %v3240_v61   ;;  %v2448_v25 = vrot.slane %v2440_v5, %v4692_v10  ;;  %v3244_v58 = vcombine.low %v1768_v47, %v1772_v30  ;;  %v1232_v16 = vrot.slane %v4877_v44, %v4662_v34  ;;  %v1236_v59 = vrot.slane %v4877_v44, %v4665_v31 }
 0x24a   : > { %v2455_v21 = vrot.slane %v2441_v56, %v4692_v10  ;;  %v3251_v41 = vrot.slane %v3241_v7, %v4692_v10  ;;  %v3258_v35 = vrot.slane %v3242_v63, %v4692_v10  ;;  %v3265_v60 = vrot.slane %v3243_v6, %v4692_v10 }
 0x24b   : > { %v3272_v62 = vrot.slane %v3244_v58, %v4692_v10  ;;  %v1240_v36 = vrot.slane %v4877_v44, %v4668_v38  ;;  %v1244_v55 = vrot.slane %v4877_v44, %v4671_v50  ;;  %v1248_v19 = vrot.slane %v4877_v44, %v4674_v54 }
 0x24c   : > { %v2456_v49 = vcombine.low %v2448_v25, %v2455_v21  ;;  %v3273_v51 = vcombine.low %v3251_v41, %v3258_v35  ;;  %v1252_v28 = vrot.slane %v4877_v44, %v4677_v18  ;;  %v1256_v22 = vrot.slane %v4877_v44, %v4680_v23 }
 0x24d   : > { %v3274_v4 = vcombine.low %v3265_v60, %v3272_v62  ;;  %v1260_v33 = vrot.slane %v4877_v44, %v4689_v8  ;;  %v2457_v2 = vcombine.low %v1232_v16, %v1236_v59  ;;  %v2458_v46 = vcombine.low %v1240_v36, %v1244_v55 }
 0x24e   : > { %3471 = vperm.xlu1 %3898, %v2456_v49   ;;  %v3281_v53 = vrot.slane %v3273_v51, %v4692_v10  ;;  %v2459_v26 = vcombine.low %v1248_v19, %v1252_v28  ;;  %v1776_v11 = vrot.slane %v5171_v57, %v4662_v34  ;;  %v1780_v0 = vrot.slane %v5171_v57, %v4665_v31 }
 0x24f   : > { %v3288_v42 = vrot.slane %v3274_v4, %v4692_v10  ;;  %v2460_v48 = vcombine.low %v1256_v22, %v1260_v33  ;;  %v2467_v52 = vrot.slane %v2457_v2, %v4692_v10  ;;  %v2474_v43 = vrot.slane %v2458_v46, %v4692_v10 }
 0x250   : > { %v2481_v44 = vrot.slane %v2459_v26, %v4692_v10  ;;  %v1784_v24 = vrot.slane %v5171_v57, %v4668_v38  ;;  %v1788_v15 = vrot.slane %v5171_v57, %v4671_v50  ;;  %v1792_v1 = vrot.slane %v5171_v57, %v4674_v54 }
 0x251   : > { %v3289_v17 = vcombine.low %v3281_v53, %v3288_v42  ;;  %v2488_v37 = vrot.slane %v2460_v48, %v4692_v10  ;;  %v2489_v39 = vcombine.low %v2467_v52, %v2474_v43  ;;  %v1796_v32 = vrot.slane %v5171_v57, %v4677_v18 }
 0x252   : > { %v1800_v14 = vrot.slane %v5171_v57, %v4680_v23  ;;  %v1804_v12 = vrot.slane %v5171_v57, %v4689_v8  ;;  %v3290_v45 = vcombine.low %v1776_v11, %v1780_v0  ;;  %v3291_v27 = vcombine.low %v1784_v24, %v1788_v15 }
 0x253   : > { %3522 = vperm.xlu0 %3897, %v3289_v17   ;;  %v2490_v3 = vcombine.low %v2481_v44, %v2488_v37  ;;  %v2497_v61 = vrot.slane %v2489_v39, %v4692_v10  ;;  %v3292_v5 = vcombine.low %v1792_v1, %v1796_v32  ;;  %v1264_v47 = vrot.slane %v4890_v20, %v4662_v34 }
 0x254   : > { %v3293_v30 = vcombine.low %v1800_v14, %v1804_v12  ;;  %v3300_v56 = vrot.slane %v3290_v45, %v4692_v10  ;;  %v3307_v7 = vrot.slane %v3291_v27, %v4692_v10  ;;  %v1268_v63 = vrot.slane %v4890_v20, %v4665_v31 }
 0x255   : > { %v2504_v57 = vrot.slane %v2490_v3, %v4692_v10  ;;  %v3314_v6 = vrot.slane %v3292_v5, %v4692_v10  ;;  %v1272_v25 = vrot.slane %v4890_v20, %v4668_v38  ;;  %v1276_v58 = vrot.slane %v4890_v20, %v4671_v50 }
 0x256   : > { %v3321_v16 = vrot.slane %v3293_v30, %v4692_v10  ;;  %v3322_v59 = vcombine.low %v3300_v56, %v3307_v7  ;;  %v1280_v21 = vrot.slane %v4890_v20, %v4674_v54  ;;  %v1284_v41 = vrot.slane %v4890_v20, %v4677_v18 }
 0x257   : > { %v2505_v35 = vcombine.low %v2497_v61, %v2504_v57  ;;  %v1288_v60 = vrot.slane %v4890_v20, %v4680_v23  ;;  %v1292_v62 = vrot.slane %v4890_v20, %v4689_v8  ;;  %v2506_v36 = vcombine.low %v1264_v47, %v1268_v63 }
 0x258   : > { %v3323_v55 = vcombine.low %v3314_v6, %v3321_v16  ;;  %v3330_v19 = vrot.slane %v3322_v59, %v4692_v10  ;;  %v2507_v49 = vcombine.low %v1272_v25, %v1276_v58  ;;  %v2508_v51 = vcombine.low %v1280_v21, %v1284_v41 }
 0x259   : > { %3474 = vperm.xlu1 %3898, %v2505_v35   ;;  %v2509_v28 = vcombine.low %v1288_v60, %v1292_v62  ;;  %v2516_v22 = vrot.slane %v2506_v36, %v4692_v10  ;;  %v1808_v4 = vrot.slane %v5178_v40, %v4662_v34  ;;  %v1812_v33 = vrot.slane %v5178_v40, %v4665_v31 }
 0x25a   : > { %v3337_v2 = vrot.slane %v3323_v55, %v4692_v10  ;;  %v2523_v20 = vrot.slane %v2507_v49, %v4692_v10  ;;  %v2530_v46 = vrot.slane %v2508_v51, %v4692_v10  ;;  %v1816_v53 = vrot.slane %v5178_v40, %v4668_v38 }
 0x25b   : > { %v2537_v26 = vrot.slane %v2509_v28, %v4692_v10  ;;  %v1820_v11 = vrot.slane %v5178_v40, %v4671_v50  ;;  %v1824_v0 = vrot.slane %v5178_v40, %v4674_v54  ;;  %v1828_v42 = vrot.slane %v5178_v40, %v4677_v18 }
 0x25c   : > { %v3338_v48 = vcombine.low %v3330_v19, %v3337_v2  ;;  %v2538_v52 = vcombine.low %v2516_v22, %v2523_v20  ;;  %v1832_v43 = vrot.slane %v5178_v40, %v4680_v23  ;;  %v1836_v44 = vrot.slane %v5178_v40, %v4689_v8 }
 0x25d   : > { %v2539_v24 = vcombine.low %v2530_v46, %v2537_v26  ;;  %v3339_v15 = vcombine.low %v1808_v4, %v1812_v33  ;;  %v3340_v1 = vcombine.low %v1816_v53, %v1820_v11  ;;  %v3341_v17 = vcombine.low %v1824_v0, %v1828_v42 }
 0x25e   : > { %3525 = vperm.xlu0 %3897, %v3338_v48   ;;  %v2546_v37 = vrot.slane %v2538_v52, %v4692_v10  ;;  %v3342_v39 = vcombine.low %v1832_v43, %v1836_v44  ;;  %v1296_v32 = vrot.slane %v4892_v29, %v4662_v34  ;;  %v1300_v14 = vrot.slane %v4892_v29, %v4665_v31 }
 0x25f   : > { %v2553_v12 = vrot.slane %v2539_v24, %v4692_v10  ;;  %v3349_v45 = vrot.slane %v3339_v15, %v4692_v10  ;;  %v3356_v40 = vrot.slane %v3340_v1, %v4692_v10  ;;  %v3363_v27 = vrot.slane %v3341_v17, %v4692_v10 }
 0x260   : > { %v3370_v3 = vrot.slane %v3342_v39, %v4692_v10  ;;  %v1304_v61 = vrot.slane %v4892_v29, %v4668_v38  ;;  %v1308_v5 = vrot.slane %v4892_v29, %v4671_v50  ;;  %v1312_v47 = vrot.slane %v4892_v29, %v4674_v54 }
 0x261   : > { %v2554_v30 = vcombine.low %v2546_v37, %v2553_v12  ;;  %v3371_v56 = vcombine.low %v3349_v45, %v3356_v40  ;;  %v1316_v7 = vrot.slane %v4892_v29, %v4677_v18  ;;  %v1320_v63 = vrot.slane %v4892_v29, %v4680_v23 }
 0x262   : > { %v3372_v57 = vcombine.low %v3363_v27, %v3370_v3  ;;  %v1324_v6 = vrot.slane %v4892_v29, %v4689_v8  ;;  %v2555_v25 = vcombine.low %v1296_v32, %v1300_v14  ;;  %v2556_v58 = vcombine.low %v1304_v61, %v1308_v5 }
 0x263   : > { %3477 = vperm.xlu1 %3898, %v2554_v30   ;;  %v3379_v16 = vrot.slane %v3371_v56, %v4692_v10  ;;  %v2557_v59 = vcombine.low %v1312_v47, %v1316_v7  ;;  %v1840_v21 = vrot.slane %v5228_v9, %v4662_v34  ;;  %v1844_v41 = vrot.slane %v5228_v9, %v4665_v31  ;;  %v5589_v56 = vpop.permute.xlu1 %3441 }
 0x264   : > { %v3386_v35 = vrot.slane %v3372_v57, %v4692_v10  ;;  %v2558_v60 = vcombine.low %v1320_v63, %v1324_v6  ;;  %v2565_v62 = vrot.slane %v2555_v25, %v4692_v10  ;;  %v2572_v36 = vrot.slane %v2556_v58, %v4692_v10  ;;  %v3439_v58 = vpop.permute.xlu0 %3438 }
 0x265   : > { %v2579_v29 = vrot.slane %v2557_v59, %v4692_v10  ;;  %v1848_v55 = vrot.slane %v5228_v9, %v4668_v38  ;;  %v1852_v19 = vrot.slane %v5228_v9, %v4671_v50  ;;  %v1856_v49 = vrot.slane %v5228_v9, %v4674_v54 }
 0x266   : > { %v3387_v51 = vcombine.low %v3379_v16, %v3386_v35  ;;  %v2586_v28 = vrot.slane %v2558_v60, %v4692_v10  ;;  %v2587_v22 = vcombine.low %v2565_v62, %v2572_v36  ;;  %v1860_v4 = vrot.slane %v5228_v9, %v4677_v18 }
 0x267   : > { %v1864_v33 = vrot.slane %v5228_v9, %v4680_v23  ;;  %v1868_v2 = vrot.slane %v5228_v9, %v4689_v8  ;;  %v3388_v20 = vcombine.low %v1840_v21, %v1844_v41  ;;  %v3389_v46 = vcombine.low %v1848_v55, %v1852_v19  ;;  %v5591_v7 = vpop.permute.xlu1 %3444 }
 0x268   : > { %3528 = vperm.xlu0 %3897, %v3387_v51   ;;  %v2588_v53 = vcombine.low %v2579_v29, %v2586_v28  ;;  %v2595_v26 = vrot.slane %v2587_v22, %v4692_v10  ;;  %v3390_v11 = vcombine.low %v1856_v49, %v1860_v4  ;;  %v1328_v0 = vrot.slane %v4915_v13, %v4662_v34  ;;  %v5603_v59 = vpop.permute.xlu0 %3465 }
 0x269   : > { %v3391_v42 = vcombine.low %v1864_v33, %v1868_v2  ;;  %v3398_v48 = vrot.slane %v3388_v20, %v4692_v10  ;;  %v3405_v52 = vrot.slane %v3389_v46, %v4692_v10  ;;  %v1332_v43 = vrot.slane %v4915_v13, %v4665_v31  ;;  %v5761_v2 = vld [vmem:[#allocation8_spill] sm:$0xff] }
 0x26a   : > { %v2602_v9 = vrot.slane %v2588_v53, %v4692_v10  ;;  %v3412_v44 = vrot.slane %v3390_v11, %v4692_v10  ;;  %v1336_v24 = vrot.slane %v4915_v13, %v4668_v38  ;;  %v1340_v15 = vrot.slane %v4915_v13, %v4671_v50 }
 0x26b   : > { %v3419_v34 = vrot.slane %v3391_v42, %v4692_v10  ;;  %v3420_v1 = vcombine.low %v3398_v48, %v3405_v52  ;;  %v1344_v17 = vrot.slane %v4915_v13, %v4674_v54  ;;  %v1348_v37 = vrot.slane %v4915_v13, %v4677_v18  ;;  %v5593_v63 = vpop.permute.xlu1 %3447 }
 0x26c   : > { %v2603_v31 = vcombine.low %v2595_v26, %v2602_v9  ;;  %v1352_v39 = vrot.slane %v4915_v13, %v4680_v23  ;;  %v1356_v32 = vrot.slane %v4915_v13, %v4689_v8  ;;  %v2604_v38 = vcombine.low %v1328_v0, %v1332_v43 }
 0x26d   : > { %v3421_v14 = vcombine.low %v3412_v44, %v3419_v34  ;;  %v3428_v50 = vrot.slane %v3420_v1, %v4692_v10  ;;  %v2605_v12 = vcombine.low %v1336_v24, %v1340_v15  ;;  %v2606_v45 = vcombine.low %v1344_v17, %v1348_v37 }
 0x26e   : > { %3480 = vperm.xlu1 %3898, %v2603_v31   ;;  %v2607_v40 = vcombine.low %v1352_v39, %v1356_v32  ;;  %v2614_v54 = vrot.slane %v2604_v38, %v4692_v10  ;;  %v5760_v51 = vlaneseq }
 0x26f   : > { %v3435_v27 = vrot.slane %v3421_v14, %v4692_v10  ;;  %v2621_v18 = vrot.slane %v2605_v12, %v4692_v10  ;;  %v2628_v3 = vrot.slane %v2606_v45, %v4692_v10  ;;  %v5595_v57 = vpop.permute.xlu1 %3450 }
 0x270   : > { %v2635_v23 = vrot.slane %v2607_v40, %v4692_v10  ;;  %v5612_v28 = vand.u32 127, %v5760_v51  ;;  %vm3741_vm15 = vcmp.lt.s32.totalorder %v5760_v51, 256 }
 0x271   : > { %v3436_v61 = vcombine.low %v3428_v50, %v3435_v27  ;;  %v2636_v8 = vcombine.low %v2614_v54, %v2621_v18 }
 0x272   : > { %v2637_v13 = vcombine.low %v2628_v3, %v2635_v23  ;;  %v3539_v4 = vadd.s32 4294967288, %v5612_v28  ;;  %v3553_v46 = vadd.s32 4294967272, %v5612_v28  ;;  %v3546_v53 = vadd.s32 4294967280, %v5612_v28 }
 0x273   : > { %3531 = vperm.xlu0 %3897, %v3436_v61   ;;  %v2644_v5 = vrot.slane %v2636_v8, %v4692_v10  ;;  %v5597_v6 = vpop.permute.xlu1 %3453  ;;  %v3537_v11 = vsub.s32 %v5612_v28, %v5761_v2  ;;  %v3567_v52 = vadd.s32 4294967256, %v5612_v28  ;;  %v3560_v44 = vadd.s32 4294967264, %v5612_v28 }
 0x274   : > { %v2651_v47 = vrot.slane %v2637_v13, %v4692_v10  ;;  %v3542_v20 = vsub.s32 %v3539_v4, %v5761_v2  ;;  %v3556_v48 = vsub.s32 %v3553_v46, %v5761_v2  ;;  %v3549_v9 = vsub.s32 %v3546_v53, %v5761_v2 }
 0x275   : > { %v3570_v17 = vsub.s32 %v3567_v52, %v5761_v2  ;;  %v3581_v37 = vadd.s32 4294967240, %v5612_v28  ;;  %v3563_v31 = vsub.s32 %v3560_v44, %v5761_v2  ;;  %v3574_v39 = vadd.s32 4294967248, %v5612_v28 }
 0x276   : > { %v2652_v30 = vcombine.low %v2644_v5, %v2651_v47  ;;  %v3543_v14 = vrot.slane %v5589_v56, %v3542_v20  ;;  %v3538_v45 = vrot.slane %v3439_v58, %v3537_v11  ;;  %v3550_v40 = vrot.slane %v5591_v7, %v3549_v9 }
 0x277   : > { %v5599_v25 = vpop.permute.xlu1 %3456  ;;  %v3557_v27 = vrot.slane %v5593_v63, %v3556_v48  ;;  %v3595_v18 = vadd.s32 4294967224, %v5612_v28  ;;  %v3584_v3 = vsub.s32 %v3581_v37, %v5761_v2  ;;  %v3577_v23 = vsub.s32 %v3574_v39, %v5761_v2 }
 0x278   : > { %3483 = vperm.xlu1 %3898, %v2652_v30   ;;  %v3588_v61 = vadd.s32 4294967232, %v5612_v28  ;;  %v3545_v5 = vsel %vm3544_vm0, %v3543_v14, %v3538_v45  ;;  %v3564_v7 = vrot.slane %v5595_v57, %v3563_v31  ;;  %v3616_v53 = vadd.s32 4294967200, %v5612_v28 }
 0x279   : > { %v3552_v56 = vsel %vm3551_vm1, %v3550_v40, %v3545_v5 }
 0x27b   : > { %v5601_v16 = vpop.permute.xlu1 %3459 }
 0x27f   : > { %v5605_v21 = vpop.permute.xlu1 %3462 }
 0x280   : > { %v3487_v41 = vpop.permute.xlu0 %3486 }
 0x281   : > { %v3647_v43 = vrot.slane %v3487_v41, %v3537_v11  ;;  %v3559_v41 = vsel %vm3558_vm2, %v3557_v27, %v3552_v56 }
 0x282   : > { %v3566_v4 = vsel %vm3565_vm3, %v3564_v7, %v3559_v41 }
 0x288   : > { %v5607_v35 = vpop.permute.xlu1 %3468 }
 0x28c   : > { %v3493_v60 = vpop.permute.xlu0 %3492 }
 0x28d   : > { %v3656_v34 = vrot.slane %v3493_v60, %v3549_v9  ;;  %v3598_v60 = vsub.s32 %v3595_v18, %v5761_v2 }
 0x28f   : > { %v3599_v14 = vrot.slane %v5603_v59, %v3598_v60 }
 0x294   : > { %v3490_v62 = vpop.permute.xlu1 %3489 }
 0x295   : > { %v3651_v0 = vrot.slane %v3490_v62, %v3542_v20  ;;  %v3591_v62 = vsub.s32 %v3588_v61, %v5761_v2  ;;  %v3578_v20 = vrot.slane %v5599_v25, %v3577_v23 }
 0x297   : > { %v3652_v24 = vsel %vm3544_vm0, %v3651_v0, %v3647_v43  ;;  %v3585_v0 = vrot.slane %v5601_v16, %v3584_v3  ;;  %v3630_v43 = vadd.s32 4294967184, %v5612_v28  ;;  %v3637_v16 = vadd.s32 4294967176, %v5612_v28 }
 0x298   : > { %v3657_v32 = vsel %vm3551_vm1, %v3656_v34, %v3652_v24 }
 0x299   : > { %v3499_v36 = vpop.permute.xlu0 %3498 }
 0x29a   : > { %v3666_v54 = vrot.slane %v3499_v36, %v3563_v31  ;;  %v3602_v36 = vadd.s32 4294967216, %v5612_v28 }
 0x29f   : > { %v3496_v29 = vpop.permute.xlu1 %3495 }
 0x2a0   : > { %v3661_v15 = vrot.slane %v3496_v29, %v3556_v48  ;;  %v3592_v48 = vrot.slane %v5605_v21, %v3591_v62  ;;  %v3619_v21 = vsub.s32 %v3616_v53, %v5761_v2 }
 0x2a2   : > { %v3662_v50 = vsel %vm3558_vm2, %v3661_v15, %v3657_v32 }
 0x2a3   : > { %v3667_v8 = vsel %vm3565_vm3, %v3666_v54, %v3662_v50 }
 0x2a4   : > { %v3505_v55 = vpop.permute.xlu0 %3504 }
 0x2a5   : > { %v3676_v63 = vrot.slane %v3505_v55, %v3577_v23  ;;  %v3609_v55 = vadd.s32 4294967208, %v5612_v28 }
 0x2a7   : > { %v3612_v44 = vsub.s32 %v3609_v55, %v5761_v2 }
 0x2aa   : > { %v3502_v19 = vpop.permute.xlu1 %3501 }
 0x2ab   : > { %v3671_v12 = vrot.slane %v3502_v19, %v3570_v17  ;;  %v3571_v19 = vrot.slane %v5597_v6, %v3570_v17  ;;  %v3623_v6 = vadd.s32 4294967192, %v5612_v28  ;;  %v3633_v28 = vsub.s32 %v3630_v43, %v5761_v2 }
 0x2ad   : > { %v3672_v47 = vsel %vm3572_vm4, %v3671_v12, %v3667_v8  ;;  %v3626_v17 = vsub.s32 %v3623_v6, %v5761_v2  ;;  %v3640_v12 = vsub.s32 %v3637_v16, %v5761_v2 }
 0x2ae   : > { %v3677_v29 = vsel %vm3579_vm5, %v3676_v63, %v3672_v47 }
 0x2af   : > { %v5609_v49 = vpop.permute.xlu0 %3510 }
 0x2b0   : > { %v3686_v46 = vrot.slane %v5609_v49, %v3591_v62  ;;  %v3573_v49 = vsel %vm3572_vm4, %v3571_v19, %v3566_v4 }
 0x2b1   : > { %v3580_v24 = vsel %vm3579_vm5, %v3578_v20, %v3573_v49 }
 0x2b2   : > { %v3587_v34 = vsel %vm3586_vm6, %v3585_v0, %v3580_v24 }
 0x2b3   : > { %v3594_v37 = vsel %vm3593_vm7, %v3592_v48, %v3587_v34 }
 0x2b4   : > { %v3508_v22 = vpop.permute.xlu1 %3507  ;;  %v3601_v54 = vsel %vm3600_vm8, %v3599_v14, %v3594_v37 }
 0x2b5   : > { %v3681_v30 = vrot.slane %v3508_v22, %v3584_v3 }
 0x2b7   : > { %v3682_v22 = vsel %vm3586_vm6, %v3681_v30, %v3677_v29 }
 0x2b8   : > { %v3687_v52 = vsel %vm3593_vm7, %v3686_v46, %v3682_v22 }
 0x2b9   : > { %v5615_v33 = vpop.permute.xlu0 %3516 }
 0x2bf   : > { %v5620_v26 = vpop.permute.xlu1 %3513 }
 0x2c0   : > { %v3691_v57 = vrot.slane %v5620_v26, %v3598_v60  ;;  %v3605_v26 = vsub.s32 %v3602_v36, %v5761_v2 }
 0x2c2   : > { %v3692_v9 = vsel %vm3600_vm8, %v3691_v57, %v3687_v52  ;;  %v3696_v15 = vrot.slane %v5615_v33, %v3605_v26  ;;  %v3606_v31 = vrot.slane %v5607_v35, %v3605_v26 }
 0x2c4   : > { %v5624_v42 = vpop.permute.xlu0 %3519  ;;  %v3697_v39 = vsel %vm3607_vm9, %v3696_v15, %v3692_v9 }
 0x2c5   : > { %v3701_v33 = vrot.slane %v5624_v42, %v3612_v44  ;;  %v3608_v42 = vsel %vm3607_vm9, %v3606_v31, %v3601_v54 }
 0x2c7   : > { %v3702_v27 = vsel %vm3614_vm10, %v3701_v33, %v3697_v39 }
 0x2c9   : > { %v5631_v1 = vpop.permute.xlu1 %3471 }
 0x2ca   : > { %v3613_v50 = vrot.slane %v5631_v1, %v3612_v44 }
 0x2cc   : > { %v3615_v2 = vsel %vm3614_vm10, %v3613_v50, %v3608_v42 }
 0x2ce   : > { %v5638_v38 = vpop.permute.xlu0 %3522 }
 0x2cf   : > { %v3706_v45 = vrot.slane %v5638_v38, %v3619_v21 }
 0x2d1   : > { %v3707_v23 = vsel %vm3621_vm11, %v3706_v45, %v3702_v27 }
 0x2d4   : > { %v5649_v13 = vpop.permute.xlu1 %3474 }
 0x2d5   : > { %v3620_v40 = vrot.slane %v5649_v13, %v3619_v21 }
 0x2d7   : > { %v3622_v61 = vsel %vm3621_vm11, %v3620_v40, %v3615_v2 }
 0x2d9   : > { %v5655_v58 = vpop.permute.xlu0 %3525 }
 0x2da   : > { %v3711_v18 = vrot.slane %v5655_v58, %v3626_v17 }
 0x2dc   : > { %v3712_v13 = vsel %vm3628_vm12, %v3711_v18, %v3707_v23 }
 0x2de   : > { %v3478_v11 = vpop.permute.xlu1 %3477 }
 0x2df   : > { %v3627_v59 = vrot.slane %v3478_v11, %v3626_v17 }
 0x2e1   : > { %v3629_v5 = vsel %vm3628_vm12, %v3627_v59, %v3622_v61 }
 0x2e3   : > { %v3529_v25 = vpop.permute.xlu0 %3528 }
 0x2e4   : > { %v3716_v1 = vrot.slane %v3529_v25, %v3633_v28 }
 0x2e6   : > { %v3717_v30 = vsel %vm3635_vm13, %v3716_v1, %v3712_v13 }
 0x2e9   : > { %v3481_v32 = vpop.permute.xlu1 %3480 }
 0x2ea   : > { %v3634_v3 = vrot.slane %v3481_v32, %v3633_v28 }
 0x2ec   : > { %v3636_v56 = vsel %vm3635_vm13, %v3634_v3, %v3629_v5 }
 0x2ee   : > { %v3532_v35 = vpop.permute.xlu0 %3531 }
 0x2ef   : > { %v3721_v38 = vrot.slane %v3532_v35, %v3640_v12 }
 0x2f1   : > { %v3722_v7 = vsel %vm3642_vm14, %v3721_v38, %v3717_v30 }
 0x2f3   : > { %v3484_v8 = vpop.permute.xlu1 %3483 }
 0x2f4   : > { %v3641_v47 = vrot.slane %v3484_v8, %v3640_v12 }
 0x2f6   : > { %v3643_v63 = vsel %vm3642_vm14, %v3641_v47, %v3636_v56 }
 0x2f7   : > { %v3723_v58 = vcombine.low %v3643_v63, %v3722_v7 }
 0x2f9   : > { %v3730_v41 = vrot.slane %v3723_v58, %v4692_v10 }
 0x2fb   : > { %v3737_v60 = vrot.slane %v3730_v41, %v4692_v10 }
 0x2fd   : > { %3743 = vst.msk [vmem:[%s188_s19] sm:$0x3] %vm3741_vm15, %v3737_v60 }
 0x2fe   : > { %4004 = shalt.err (!%p4001_p10)
}
 0x2ff   : > { %s4005_s10 = scalar_lea.hbm %s3757_s27, 32  ;;  %s4009_s23 = scalar_lea.hbm %s5744_s3, 64 }
 0x300   : > { %p4006_p0 = scmp.ne.s32.totalorder %s3757_s27, %s4005_s10  ;;  %p4010_p1 = scmp.lt.s32.totalorder %s3757_s27, %s5744_s3 }
 0x301   : > { %p4011_p3 = scmp.lt.s32.totalorder %s4009_s23, %s4005_s10 }
 0x302   : > { %p4007_p2 = pnand %p4006_p0, %p5762_p12 }
 0x303   : > { %p4012_p6 = por %p4011_p3, %p4010_p1 }
 0x304   : > { %p4008_p9 = pneg %p4007_p2 }
 0x306   : > { %p4013_p11 = pnand %p4012_p6, %p4008_p9 }
 0x308   : > { %4016 = shalt.err (!%p4013_p11)
}
 0x309   : > { %3849 = dma.vmem_to_hbm [thread:$0]  (%p5762_p12), %s3760_s20, 32, %s3757_s27, %s3745_s28  }
 0x30a PF: > { %s3771_s7 = sand.u32 1, %s4043_s12   ;;  %p5763_p13 = scmp.ne.s32.totalorder %s5754_s25, 0 }
 0x30b   : > { %p5764_p4 = scmp.ge.s32.totalorder %s4055_s15, 2  ;;  %s3772_s8 = scalar_lea.sflag [#allocation4], %s3771_s7 }
 0x30d   : > { %p3856_p5 = pnand %p5764_p4, %p5763_p13 }
 0x30f   : > { %p3857_p7 = pneg %p3856_p5 }
 0x311   : > { %4038 = dma.done.wait (%p3857_p7), %s3772_s8, 32  }
 0x312   : > { %4040 = vsyncadd (%p3857_p7), %s3772_s8, 4294967264  ;;  %p16_p8 = scmp.ge.s32.totalorder %s4108_s18, 4   ;;  %s5765_s12 = smov %s4047_s13 }
 0x313   : > { %s5766_s13 = smov %s4051_s14  ;;  %s5767_s14 = smov %s4120_s21 }
 0x314   : > { %s5768_s15 = smov %s4108_s18  ;;  %18 = sbr.rel (!%p16_p8) target bundleno = 5 (0x5), region = 77 }
 0x319   :  { %3777 = vsyncpa [#allocation3], 1 }
 0x31a   :  { %3779 = vsyncpa [#allocation3 + $0x1], 1 }
 0x31b   :  { %3780 = vsyncpa [#allocation4], 1 }
 0x31c   :  { %3782 = vsyncpa [#allocation4 + $0x1], 1 }

</bundles_post_ra>
